<compile_context>
chip_gen: v5e
topology: v5e:2x2
jax: 0.10.0
libtpu: 0.0.40
codegen_flags: <defaults>
</compile_context>

<pallas_src>
import jax
import jax.numpy as jnp
import numpy as np
from jax.experimental import pallas as pl
from jax.experimental.pallas import tpu as pltpu

# Logical (small stand-in) sizes, consistent with the PyTorch module.
HIDDEN = 32       # hidden_size (stand-in for 300)
VOCAB = 64        # output_size (stand-in for 1021)
MAX_LEN = 16      # max_length  (stand-in for 79)
NUM_LAYERS = 2    # the module's GRU has num_layers=2

# Lane-aligned padded sizes (multiples of 128) used end-to-end inside the kernel.
HP = 128          # padded hidden
VP = 128          # padded vocab
LP = 128          # padded max_length
G3 = 3 * HP       # fused GRU gate width (r|z|n)

# Row offsets inside the 128-column weight slab (split-cat layout).
ATTN_E = 0            # (HP, LP)  emb-half of attn
ATTN_H = HP           # (HP, LP)  hidden-half of attn
COMB_E = 2 * HP       # (HP, HP)  emb-half of attn_combine
COMB_A = 3 * HP       # (HP, HP)  applied-half of attn_combine
OUT_O = 4 * HP        # (HP, VP)  out projection
W128_ROWS = 5 * HP

MASK = -1e30  # additive mask baked into padded f32 bias lanes (softmax / log_softmax)


def attn_decoder_kernel(toks_ref,                                   # scalar prefetch (SMEM)
                        emb_ref, w128_ref, wih_ref, whh_ref, bias_ref,
                        hid0_ref, enc_ref,                           # inputs (VMEM, resident)
                        logp_ref, hid_ref, attn_w_ref):              # outputs
    t = pl.program_id(0)
    wdt = w128_ref.dtype  # bf16 weight slabs; activations / accumulation stay f32

    # Initialize the resident hidden carry from the input hidden on the first step.
    @pl.when(t == 0)
    def _():
        hid_ref[...] = hid0_ref[...]

    emb = emb_ref[0, :, :]                     # (1, HP)  gathered row (dropout = identity)
    hid = hid_ref[...]                         # (2, HP)  f32 carry
    h0 = hid[0:1, :]
    h1 = hid[1:2, :]
    hid_b = hid.astype(wdt)

    # attn_weights = softmax(attn(cat(embedded, h0))) -- two dots on split slab halves.
    scores = (jnp.dot(emb, w128_ref[ATTN_E:ATTN_E + HP, :],
                      preferred_element_type=jnp.float32)
              + jnp.dot(h0.astype(wdt), w128_ref[ATTN_H:ATTN_H + HP, :],
                        preferred_element_type=jnp.float32)
              + bias_ref[0:1, 0:LP])                                  # padded lanes ~ -1e30
    m = jnp.max(scores, axis=1, keepdims=True)
    e = jnp.exp(scores - m)
    attn_w = e / jnp.sum(e, axis=1, keepdims=True)                    # exact normalization
    attn_w_ref[0, :, :] = attn_w

    # attn_applied = bmm(attn_weights, encoder_outputs)   (f32 activations)
    attn_applied = jnp.dot(attn_w, enc_ref[...], preferred_element_type=jnp.float32)

    # output = relu(attn_combine(cat(embedded, attn_applied)))
    x = (jnp.dot(emb, w128_ref[COMB_E:COMB_E + HP, :],
                 preferred_element_type=jnp.float32)
         + jnp.dot(attn_applied.astype(wdt), w128_ref[COMB_A:COMB_A + HP, :],
                   preferred_element_type=jnp.float32)
         + bias_ref[1:2, 0:HP])
    x = jnp.maximum(x, 0.0)

    # 2-layer GRU, single time step; PyTorch [r, z, n] gate order.
    # Both hidden-side gate matmuls fused into a single MXU push.
    gh_both = jnp.dot(hid_b, whh_ref[...], preferred_element_type=jnp.float32)  # (2, 2*G3)
    gh0 = gh_both[0:1, 0:G3] + bias_ref[4:5, :]
    gh1 = gh_both[1:2, G3:2 * G3] + bias_ref[5:6, :]

    def gru_update(gi, gh, h):
        r = jax.nn.sigmoid(gi[:, 0:HP] + gh[:, 0:HP])
        z = jax.nn.sigmoid(gi[:, HP:2 * HP] + gh[:, HP:2 * HP])
        n = jnp.tanh(gi[:, 2 * HP:3 * HP] + r * gh[:, 2 * HP:3 * HP])
        return (1.0 - z) * n + z * h

    gi0 = jnp.dot(x.astype(wdt), wih_ref[0:HP, :],
                  preferred_element_type=jnp.float32) + bias_ref[2:3, :]
    h0n = gru_update(gi0, gh0, h0)
    gi1 = jnp.dot(h0n.astype(wdt), wih_ref[HP:2 * HP, :],
                  preferred_element_type=jnp.float32) + bias_ref[3:4, :]
    h1n = gru_update(gi1, gh1, h1)

    hid_ref[0:1, :] = h0n                                            # two row stores
    hid_ref[1:2, :] = h1n

    # output = log_softmax(out(gru_output))
    logits = (jnp.dot(h1n.astype(wdt), w128_ref[OUT_O:OUT_O + HP, :],
                      preferred_element_type=jnp.float32)
              + bias_ref[6:7, 0:VP])                                 # padded lanes ~ -1e30
    mm = jnp.max(logits, axis=1, keepdims=True)
    sh = logits - mm
    lse = jnp.log(jnp.sum(jnp.exp(sh), axis=1, keepdims=True))
    logp_ref[0, :, :] = sh - lse


def init_params(key):
    def u(k, shape, scale=0.1):
        return jax.random.uniform(k, shape, jnp.float32, -scale, scale)
    names_shapes = [
        ("embedding", (VOCAB, HIDDEN)),
        ("attn_w", (MAX_LEN, 2 * HIDDEN)), ("attn_b", (MAX_LEN,)),
        ("comb_w", (HIDDEN, 2 * HIDDEN)), ("comb_b", (HIDDEN,)),
        ("gru_w_ih_l0", (3 * HIDDEN, HIDDEN)), ("gru_w_hh_l0", (3 * HIDDEN, HIDDEN)),
        ("gru_b_ih_l0", (3 * HIDDEN,)), ("gru_b_hh_l0", (3 * HIDDEN,)),
        ("gru_w_ih_l1", (3 * HIDDEN, HIDDEN)), ("gru_w_hh_l1", (3 * HIDDEN, HIDDEN)),
        ("gru_b_ih_l1", (3 * HIDDEN,)), ("gru_b_hh_l1", (3 * HIDDEN,)),
        ("out_w", (VOCAB, HIDDEN)), ("out_b", (VOCAB,)),
    ]
    keys = jax.random.split(key, len(names_shapes))
    return {n: u(k, s) for k, (n, s) in zip(keys, names_shapes)}


def pack_params(params, weight_dtype=jnp.bfloat16):
    """One-time preprocessing: pre-transpose, zero-pad and pack all weights into
    contiguous lane-aligned slabs; cast weight slabs to bf16 (bias/masks stay f32)."""
    H = HIDDEN

    # Embedding table, (VP, 1, HP): leading dim is gathered by BlockSpec per step.
    emb_tab = jnp.zeros((VP, 1, HP), jnp.float32).at[:VOCAB, 0, :H].set(params["embedding"])

    # 128-column slab: attn (split-cat), attn_combine (split-cat), out.
    w128 = jnp.zeros((W128_ROWS, 128), jnp.float32)
    aw = params["attn_w"]                                          # (L, 2H) torch layout
    w128 = w128.at[ATTN_E:ATTN_E + H, :MAX_LEN].set(aw[:, :H].T)
    w128 = w128.at[ATTN_H:ATTN_H + H, :MAX_LEN].set(aw[:, H:].T)
    cw = params["comb_w"]                                          # (H, 2H)
    w128 = w128.at[COMB_E:COMB_E + H, :H].set(cw[:, :H].T)
    w128 = w128.at[COMB_A:COMB_A + H, :H].set(cw[:, H:].T)
    ow = params["out_w"]                                           # (V, H)
    w128 = w128.at[OUT_O:OUT_O + H, :VOCAB].set(ow.T)

    def gate_blocks(wmat):                                         # (3H, H) -> (HP, G3), [r|z|n]
        slab = jnp.zeros((HP, G3), jnp.float32)
        for g in range(3):
            slab = slab.at[:H, g * HP:g * HP + H].set(wmat[g * H:(g + 1) * H, :].T)
        return slab

    # Input-side GRU weights stacked along rows (layer 0, layer 1).
    w_ih = jnp.concatenate([gate_blocks(params["gru_w_ih_l0"]),
                            gate_blocks(params["gru_w_ih_l1"])], axis=0)   # (2HP, G3)
    # Hidden-side GRU weights packed side by side for one fused (2,HP)x(HP,2*G3) push.
    w_hh = jnp.concatenate([gate_blocks(params["gru_w_hh_l0"]),
                            gate_blocks(params["gru_w_hh_l1"])], axis=1)   # (HP, 2*G3)

    def gate_bias(bvec):                                           # (3H,) -> (G3,)
        row = jnp.zeros((G3,), jnp.float32)
        for g in range(3):
            row = row.at[g * HP:g * HP + H].set(bvec[g * H:(g + 1) * H])
        return row

    # Bias slab (8, G3), f32 so the -1e30 softmax masks stay exact.
    bias = jnp.zeros((8, G3), jnp.float32)
    bias = bias.at[0, :LP].set(jnp.full((LP,), MASK, jnp.float32).at[:MAX_LEN].set(params["attn_b"]))
    bias = bias.at[1, :H].set(params["comb_b"])
    bias = bias.at[2, :].set(gate_bias(params["gru_b_ih_l0"]))
    bias = bias.at[3, :].set(gate_bias(params["gru_b_ih_l1"]))
    bias = bias.at[4, :].set(gate_bias(params["gru_b_hh_l0"]))
    bias = bias.at[5, :].set(gate_bias(params["gru_b_hh_l1"]))
    bias = bias.at[6, :VP].set(jnp.full((VP,), MASK, jnp.float32).at[:VOCAB].set(params["out_b"]))

    return {"emb_tab": emb_tab.astype(weight_dtype),
            "w128": w128.astype(weight_dtype),
            "w_ih": w_ih.astype(weight_dtype),
            "w_hh": w_hh.astype(weight_dtype),
            "bias": bias}


def _decode_impl(packed, token_ids, hidden_state, encoder_outputs):
    """Run T teacher-forced decode steps of the module's forward() in ONE pallas_call.
    token_ids: (T,) int32; hidden_state: (2,1,H); encoder_outputs: (L,H)."""
    T = token_ids.shape[0]
    hid0 = jnp.zeros((NUM_LAYERS, HP), jnp.float32).at[:, :HIDDEN].set(
        hidden_state.reshape(NUM_LAYERS, HIDDEN).astype(jnp.float32))
    enc = jnp.zeros((LP, HP), jnp.float32).at[:MAX_LEN, :HIDDEN].set(
        encoder_outputs.astype(jnp.float32))
    toks = token_ids.astype(jnp.int32)

    resident = lambda t, toks: (0, 0)   # weight slabs / hidden: same block every step
    grid_spec = pltpu.PrefetchScalarGridSpec(
        num_scalar_prefetch=1,
        grid=(T,),
        in_specs=[
            # Per-step embedding row gather driven by the prefetched token ids.
            pl.BlockSpec((1, 1, HP), lambda t, toks: (toks[t], 0, 0)),
            pl.BlockSpec((W128_ROWS, 128), resident),
            pl.BlockSpec((2 * HP, G3), resident),
            pl.BlockSpec((HP, 2 * G3), resident),
            pl.BlockSpec((8, G3), resident),
            pl.BlockSpec((NUM_LAYERS, HP), resident),
            pl.BlockSpec((LP, HP), resident),
        ],
        out_specs=(
            pl.BlockSpec((1, 1, VP), lambda t, toks: (t, 0, 0)),     # per-step log-probs
            pl.BlockSpec((NUM_LAYERS, HP), resident),                # resident hidden carry
            pl.BlockSpec((1, 1, LP), lambda t, toks: (t, 0, 0)),     # per-step attn weights
        ),
    )

    logp_p, hid_p, attn_p = pl.pallas_call(
        attn_decoder_kernel,
        grid_spec=grid_spec,
        out_shape=(
            jax.ShapeDtypeStruct((T, 1, VP), jnp.float32),
            jax.ShapeDtypeStruct((NUM_LAYERS, HP), jnp.float32),
            jax.ShapeDtypeStruct((T, 1, LP), jnp.float32),
        ),
        compiler_params=pltpu.CompilerParams(dimension_semantics=("arbitrary",)),
    )(toks, packed["emb_tab"], packed["w128"], packed["w_ih"], packed["w_hh"],
      packed["bias"], hid0, enc)

    logp = logp_p[:, 0, :VOCAB]                                    # (T, V)
    hidden_new = hid_p[:, :HIDDEN].reshape(NUM_LAYERS, 1, HIDDEN)  # final hidden
    attn_w = attn_p[:, 0, :MAX_LEN]                                # (T, L)
    return logp, hidden_new, attn_w


attn_decoder_decode = jax.jit(_decode_impl)


def attn_decoder_forward(packed, input_idx, hidden_state, encoder_outputs):
    """Single-step forward matching the PyTorch module's forward() (T=1)."""
    toks = jnp.asarray(input_idx, jnp.int32).reshape(1)
    return attn_decoder_decode(packed, toks, hidden_state, encoder_outputs)


def reference_forward(params, input_idx, hidden_state, encoder_outputs):
    """Pure-JAX f32 mirror of the PyTorch forward (eval mode)."""
    embedded = params["embedding"][input_idx][None, :]
    h0, h1 = hidden_state[0], hidden_state[1]
    scores = jnp.concatenate([embedded, h0], 1) @ params["attn_w"].T + params["attn_b"]
    attn_w = jax.nn.softmax(scores, axis=1)
    attn_applied = attn_w @ encoder_outputs
    x = jnp.concatenate([embedded, attn_applied], 1) @ params["comb_w"].T + params["comb_b"]
    x = jnp.maximum(x, 0.0)

    def cell(x, h, wih, whh, bih, bhh):
        gi = x @ wih.T + bih
        gh = h @ whh.T + bhh
        ir, iz, in_ = jnp.split(gi, 3, axis=1)
        hr, hz, hn = jnp.split(gh, 3, axis=1)
        r = jax.nn.sigmoid(ir + hr)
        z = jax.nn.sigmoid(iz + hz)
        n = jnp.tanh(in_ + r * hn)
        return (1.0 - z) * n + z * h

    h0n = cell(x, h0, params["gru_w_ih_l0"], params["gru_w_hh_l0"],
               params["gru_b_ih_l0"], params["gru_b_hh_l0"])
    h1n = cell(h0n, h1, params["gru_w_ih_l1"], params["gru_w_hh_l1"],
               params["gru_b_ih_l1"], params["gru_b_hh_l1"])
    logits = h1n @ params["out_w"].T + params["out_b"]
    logp = jax.nn.log_softmax(logits, axis=1)
    return logp, jnp.stack([h0n, h1n], axis=0), attn_w


def reference_decode(params, token_ids, hidden_state, encoder_outputs):
    logps, attns = [], []
    hid = hidden_state
    for tok in np.asarray(token_ids):
        logp, hid, aw = reference_forward(params, int(tok), hid, encoder_outputs)
        logps.append(logp)
        attns.append(aw)
    return jnp.concatenate(logps, 0), hid, jnp.concatenate(attns, 0)


if __name__ == "__main__":
    key = jax.random.PRNGKey(0)
    pkey, hkey, ekey = jax.random.split(key, 3)
    params = init_params(pkey)
    packed = pack_params(params)          # one-time packing (bf16 weight slabs, f32 bias)

    token_ids = jnp.array([5, 17, 42, 3], dtype=jnp.int32)   # T=4 teacher-forced decode steps
    hidden_state = 0.1 * jax.random.normal(hkey, (NUM_LAYERS, 1, HIDDEN), jnp.float32)
    encoder_outputs = jax.random.normal(ekey, (MAX_LEN, HIDDEN), jnp.float32)

    # Multi-step amortized call: one pallas_call, weights resident, hidden carried in VMEM.
    logp, hid_new, attn_w = attn_decoder_decode(packed, token_ids, hidden_state,
                                                encoder_outputs)
    jax.block_until_ready((logp, hid_new, attn_w))

    ref_logp, ref_hid, ref_attn = reference_decode(params, token_ids, hidden_state,
                                                   encoder_outputs)
    # Tolerance covers bf16 weight-slab quantization (activations/accumulation stay f32).
    np.testing.assert_allclose(np.asarray(logp), np.asarray(ref_logp), atol=2e-2, rtol=2e-2)
    np.testing.assert_allclose(np.asarray(hid_new), np.asarray(ref_hid), atol=2e-2, rtol=2e-2)
    np.testing.assert_allclose(np.asarray(attn_w), np.asarray(ref_attn), atol=2e-2, rtol=2e-2)

    # Single-step API with the module's forward() semantics (T=1 through the same kernel).
    logp1, hid1, attn1 = attn_decoder_forward(packed, jnp.int32(7), hidden_state,
                                              encoder_outputs)
    jax.block_until_ready((logp1, hid1, attn1))
    r_logp1, r_hid1, r_attn1 = reference_forward(params, 7, hidden_state, encoder_outputs)
    np.testing.assert_allclose(np.asarray(logp1), np.asarray(r_logp1), atol=2e-2, rtol=2e-2)
    np.testing.assert_allclose(np.asarray(hid1), np.asarray(r_hid1), atol=2e-2, rtol=2e-2)
    np.testing.assert_allclose(np.asarray(attn1), np.asarray(r_attn1), atol=2e-2, rtol=2e-2)

    print("KERNEL_OK")
</pallas_src>

<mosaic_0001>
module attributes {stable_mosaic.version = 11 : i64} {
  func.func @attn_decoder_kernel(%arg0: i32, %arg1: memref<4xi32, #tpu.memory_space<smem>>, %arg2: memref<1x1x128xbf16, #tpu.memory_space<vmem>>, %arg3: memref<640x128xbf16, #tpu.memory_space<vmem>>, %arg4: memref<256x384xbf16, #tpu.memory_space<vmem>>, %arg5: memref<128x768xbf16, #tpu.memory_space<vmem>>, %arg6: memref<8x384xf32, #tpu.memory_space<vmem>>, %arg7: memref<2x128xf32, #tpu.memory_space<vmem>>, %arg8: memref<128x128xf32, #tpu.memory_space<vmem>>, %arg9: memref<1x1x128xf32, #tpu.memory_space<vmem>>, %arg10: memref<2x128xf32, #tpu.memory_space<vmem>>, %arg11: memref<1x1x128xf32, #tpu.memory_space<vmem>>) attributes {dimension_semantics = [#tpu.dimension_semantics<arbitrary>], iteration_bounds = array<i64: 4>, scalar_prefetch = 1 : i64, scratch_operands = 0 : i64, tpu.core_type = #tpu.core_type<tc>, window_params = [{transform_indices = @transform_0, window_bounds = array<i64: 1, 1, 128>}, {pipeline_mode = #tpu.pipeline_mode<synchronous>, transform_indices = @transform_1, window_bounds = array<i64: 640, 128>}, {pipeline_mode = #tpu.pipeline_mode<synchronous>, transform_indices = @transform_2, window_bounds = array<i64: 256, 384>}, {pipeline_mode = #tpu.pipeline_mode<synchronous>, transform_indices = @transform_3, window_bounds = array<i64: 128, 768>}, {pipeline_mode = #tpu.pipeline_mode<synchronous>, transform_indices = @transform_4, window_bounds = array<i64: 8, 384>}, {pipeline_mode = #tpu.pipeline_mode<synchronous>, transform_indices = @transform_5, window_bounds = array<i64: 2, 128>}, {pipeline_mode = #tpu.pipeline_mode<synchronous>, transform_indices = @transform_6, window_bounds = array<i64: 128, 128>}, {transform_indices = @transform_7, window_bounds = array<i64: 1, 1, 128>}, {pipeline_mode = #tpu.pipeline_mode<synchronous>, transform_indices = @transform_8, window_bounds = array<i64: 2, 128>}, {transform_indices = @transform_9, window_bounds = array<i64: 1, 1, 128>}]} {
    %c0_i32 = arith.constant 0 : i32
    %0 = arith.cmpi eq, %arg0, %c0_i32 : i32
    %1 = arith.extui %0 : i1 to i32
    %c0_i32_0 = arith.constant 0 : i32
    %2 = arith.cmpi ne, %1, %c0_i32_0 : i32
    scf.if %2 {
      %c0_56 = arith.constant 0 : index
      %c0_57 = arith.constant 0 : index
      %131 = vector.load %arg7[%c0_56, %c0_57] : memref<2x128xf32, #tpu.memory_space<vmem>>, vector<2x128xf32>
      %c0_58 = arith.constant 0 : index
      %c0_59 = arith.constant 0 : index
      %132 = vector.load %arg10[%c0_58, %c0_59] : memref<2x128xf32, #tpu.memory_space<vmem>>, vector<2x128xf32>
      tpu.vector_store %arg10[%c0_58, %c0_59], %131 {strides = array<i32>} : memref<2x128xf32, #tpu.memory_space<vmem>>, vector<2x128xf32>,
    } else {
    }
    %c0 = arith.constant 0 : index
    %c0_1 = arith.constant 0 : index
    %c0_2 = arith.constant 0 : index
    %3 = vector.load %arg2[%c0, %c0_1, %c0_2] : memref<1x1x128xbf16, #tpu.memory_space<vmem>>, vector<1x1x128xbf16>
    %4 = vector.shape_cast %3 : vector<1x1x128xbf16> to vector<1x128xbf16>
    %c0_3 = arith.constant 0 : index
    %c0_4 = arith.constant 0 : index
    %5 = vector.load %arg10[%c0_3, %c0_4] : memref<2x128xf32, #tpu.memory_space<vmem>>, vector<2x128xf32>
    %6 = vector.extract_strided_slice %5 {offsets = [0, 0], sizes = [1, 128], strides = [1, 1]} : vector<2x128xf32> to vector<1x128xf32>
    %7 = vector.extract_strided_slice %5 {offsets = [1, 0], sizes = [1, 128], strides = [1, 1]} : vector<2x128xf32> to vector<1x128xf32>
    %8 = arith.truncf %5 : vector<2x128xf32> to vector<2x128xbf16>
    %c0_5 = arith.constant 0 : index
    %c0_6 = arith.constant 0 : index
    %9 = vector.load %arg3[%c0_5, %c0_6] : memref<640x128xbf16, #tpu.memory_space<vmem>>, vector<128x128xbf16>
    %cst = arith.constant dense<0.000000e+00> : vector<1x128xf32>
    %10 = tpu.matmul %4, %9, %cst {dimension_numbers = #tpu.dot_dimension_numbers<[1], [0], [0], [1], [0, 0, 1, 1], [], []>} : vector<1x128xbf16>, vector<128x128xbf16>, vector<1x128xf32> -> vector<1x128xf32>
    %11 = arith.truncf %6 : vector<1x128xf32> to vector<1x128xbf16>
    %c128 = arith.constant 128 : index
    %c0_7 = arith.constant 0 : index
    %12 = vector.load %arg3[%c128, %c0_7] : memref<640x128xbf16, #tpu.memory_space<vmem>>, vector<128x128xbf16>
    %cst_8 = arith.constant dense<0.000000e+00> : vector<1x128xf32>
    %13 = tpu.matmul %11, %12, %cst_8 {dimension_numbers = #tpu.dot_dimension_numbers<[1], [0], [0], [1], [0, 0, 1, 1], [], []>} : vector<1x128xbf16>, vector<128x128xbf16>, vector<1x128xf32> -> vector<1x128xf32>
    %14 = arith.addf %10, %13 : vector<1x128xf32>
    %c0_9 = arith.constant 0 : index
    %c0_10 = arith.constant 0 : index
    %15 = vector.load %arg6[%c0_9, %c0_10] : memref<8x384xf32, #tpu.memory_space<vmem>>, vector<1x128xf32>
    %16 = arith.addf %14, %15 : vector<1x128xf32>
    %cst_11 = arith.constant dense<0xFF800000> : vector<1xf32>
    %17 = vector.multi_reduction <maximumf>, %16, %cst_11 [1] : vector<1x128xf32> to vector<1xf32>
    %18 = vector.shape_cast %17 : vector<1xf32> to vector<1x1xf32>
    %19 = vector.broadcast %18 : vector<1x1xf32> to vector<1x128xf32>
    %20 = arith.subf %16, %19 : vector<1x128xf32>
    %21 = math.exp %20 : vector<1x128xf32>
    %cst_12 = arith.constant dense<0.000000e+00> : vector<1xf32>
    %22 = vector.multi_reduction <add>, %21, %cst_12 [1] : vector<1x128xf32> to vector<1xf32>
    %23 = vector.shape_cast %22 : vector<1xf32> to vector<1x1xf32>
    %24 = vector.broadcast %23 : vector<1x1xf32> to vector<1x128xf32>
    %25 = arith.divf %21, %24 : vector<1x128xf32>
    %c0_13 = arith.constant 0 : index
    %c0_14 = arith.constant 0 : index
    %c0_15 = arith.constant 0 : index
    %26 = vector.load %arg11[%c0_13, %c0_14, %c0_15] : memref<1x1x128xf32, #tpu.memory_space<vmem>>, vector<1x1x128xf32>
    %27 = vector.shape_cast %26 : vector<1x1x128xf32> to vector<1x128xf32>
    %28 = vector.shape_cast %25 : vector<1x128xf32> to vector<1x1x128xf32>
    tpu.vector_store %arg11[%c0_13, %c0_14, %c0_15], %28 {strides = array<i32>} : memref<1x1x128xf32, #tpu.memory_space<vmem>>, vector<1x1x128xf32>,
    %c0_16 = arith.constant 0 : index
    %c0_17 = arith.constant 0 : index
    %29 = vector.load %arg8[%c0_16, %c0_17] : memref<128x128xf32, #tpu.memory_space<vmem>>, vector<128x128xf32>
    %cst_18 = arith.constant dense<0.000000e+00> : vector<1x128xf32>
    %30 = tpu.matmul %25, %29, %cst_18 {dimension_numbers = #tpu.dot_dimension_numbers<[1], [0], [0], [1], [0, 0, 1, 1], [], []>} : vector<1x128xf32>, vector<128x128xf32>, vector<1x128xf32> -> vector<1x128xf32>
    %c256 = arith.constant 256 : index
    %c0_19 = arith.constant 0 : index
    %31 = vector.load %arg3[%c256, %c0_19] : memref<640x128xbf16, #tpu.memory_space<vmem>>, vector<128x128xbf16>
    %cst_20 = arith.constant dense<0.000000e+00> : vector<1x128xf32>
    %32 = tpu.matmul %4, %31, %cst_20 {dimension_numbers = #tpu.dot_dimension_numbers<[1], [0], [0], [1], [0, 0, 1, 1], [], []>} : vector<1x128xbf16>, vector<128x128xbf16>, vector<1x128xf32> -> vector<1x128xf32>
    %33 = arith.truncf %30 : vector<1x128xf32> to vector<1x128xbf16>
    %c384 = arith.constant 384 : index
    %c0_21 = arith.constant 0 : index
    %34 = vector.load %arg3[%c384, %c0_21] : memref<640x128xbf16, #tpu.memory_space<vmem>>, vector<128x128xbf16>
    %cst_22 = arith.constant dense<0.000000e+00> : vector<1x128xf32>
    %35 = tpu.matmul %33, %34, %cst_22 {dimension_numbers = #tpu.dot_dimension_numbers<[1], [0], [0], [1], [0, 0, 1, 1], [], []>} : vector<1x128xbf16>, vector<128x128xbf16>, vector<1x128xf32> -> vector<1x128xf32>
    %36 = arith.addf %32, %35 : vector<1x128xf32>
    %c1 = arith.constant 1 : index
    %c0_23 = arith.constant 0 : index
    %37 = vector.load %arg6[%c1, %c0_23] : memref<8x384xf32, #tpu.memory_space<vmem>>, vector<1x128xf32>
    %38 = arith.addf %36, %37 : vector<1x128xf32>
    %cst_24 = arith.constant 0.000000e+00 : f32
    %39 = vector.broadcast %cst_24 : f32 to vector<1x128xf32>
    %40 = arith.maximumf %38, %39 : vector<1x128xf32>
    %c0_25 = arith.constant 0 : index
    %c0_26 = arith.constant 0 : index
    %41 = vector.load %arg5[%c0_25, %c0_26] : memref<128x768xbf16, #tpu.memory_space<vmem>>, vector<128x768xbf16>
    %cst_27 = arith.constant dense<0.000000e+00> : vector<2x768xf32>
    %42 = tpu.matmul %8, %41, %cst_27 {dimension_numbers = #tpu.dot_dimension_numbers<[1], [0], [0], [1], [0, 0, 1, 1], [], []>} : vector<2x128xbf16>, vector<128x768xbf16>, vector<2x768xf32> -> vector<2x768xf32>
    %43 = vector.extract_strided_slice %42 {offsets = [0, 0], sizes = [1, 384], strides = [1, 1]} : vector<2x768xf32> to vector<1x384xf32>
    %c4 = arith.constant 4 : index
    %c0_28 = arith.constant 0 : index
    %44 = vector.load %arg6[%c4, %c0_28] : memref<8x384xf32, #tpu.memory_space<vmem>>, vector<1x384xf32>
    %45 = arith.addf %43, %44 : vector<1x384xf32>
    %46 = vector.extract_strided_slice %42 {offsets = [1, 384], sizes = [1, 384], strides = [1, 1]} : vector<2x768xf32> to vector<1x384xf32>
    %c5 = arith.constant 5 : index
    %c0_29 = arith.constant 0 : index
    %47 = vector.load %arg6[%c5, %c0_29] : memref<8x384xf32, #tpu.memory_space<vmem>>, vector<1x384xf32>
    %48 = arith.addf %46, %47 : vector<1x384xf32>
    %49 = arith.truncf %40 : vector<1x128xf32> to vector<1x128xbf16>
    %c0_30 = arith.constant 0 : index
    %c0_31 = arith.constant 0 : index
    %50 = vector.load %arg4[%c0_30, %c0_31] : memref<256x384xbf16, #tpu.memory_space<vmem>>, vector<128x384xbf16>
    %cst_32 = arith.constant dense<0.000000e+00> : vector<1x384xf32>
    %51 = tpu.matmul %49, %50, %cst_32 {dimension_numbers = #tpu.dot_dimension_numbers<[1], [0], [0], [1], [0, 0, 1, 1], [], []>} : vector<1x128xbf16>, vector<128x384xbf16>, vector<1x384xf32> -> vector<1x384xf32>
    %c2 = arith.constant 2 : index
    %c0_33 = arith.constant 0 : index
    %52 = vector.load %arg6[%c2, %c0_33] : memref<8x384xf32, #tpu.memory_space<vmem>>, vector<1x384xf32>
    %53 = arith.addf %51, %52 : vector<1x384xf32>
    %54 = vector.extract_strided_slice %53 {offsets = [0, 0], sizes = [1, 128], strides = [1, 1]} : vector<1x384xf32> to vector<1x128xf32>
    %55 = vector.extract_strided_slice %45 {offsets = [0, 0], sizes = [1, 128], strides = [1, 1]} : vector<1x384xf32> to vector<1x128xf32>
    %56 = arith.addf %54, %55 : vector<1x128xf32>
    %57 = arith.negf %56 : vector<1x128xf32>
    %58 = math.exp %57 : vector<1x128xf32>
    %cst_34 = arith.constant 1.000000e+00 : f32
    %59 = vector.broadcast %cst_34 : f32 to vector<1x128xf32>
    %60 = arith.addf %59, %58 : vector<1x128xf32>
    %61 = arith.divf %59, %60 : vector<1x128xf32>
    %62 = vector.extract_strided_slice %53 {offsets = [0, 128], sizes = [1, 128], strides = [1, 1]} : vector<1x384xf32> to vector<1x128xf32>
    %63 = vector.extract_strided_slice %45 {offsets = [0, 128], sizes = [1, 128], strides = [1, 1]} : vector<1x384xf32> to vector<1x128xf32>
    %64 = arith.addf %62, %63 : vector<1x128xf32>
    %65 = arith.negf %64 : vector<1x128xf32>
    %66 = math.exp %65 : vector<1x128xf32>
    %cst_35 = arith.constant 1.000000e+00 : f32
    %67 = vector.broadcast %cst_35 : f32 to vector<1x128xf32>
    %68 = arith.addf %67, %66 : vector<1x128xf32>
    %69 = arith.divf %67, %68 : vector<1x128xf32>
    %70 = vector.extract_strided_slice %53 {offsets = [0, 256], sizes = [1, 128], strides = [1, 1]} : vector<1x384xf32> to vector<1x128xf32>
    %71 = vector.extract_strided_slice %45 {offsets = [0, 256], sizes = [1, 128], strides = [1, 1]} : vector<1x384xf32> to vector<1x128xf32>
    %72 = arith.mulf %61, %71 : vector<1x128xf32>
    %73 = arith.addf %70, %72 : vector<1x128xf32>
    %74 = math.tanh %73 : vector<1x128xf32>
    %cst_36 = arith.constant 1.000000e+00 : f32
    %75 = vector.broadcast %cst_36 : f32 to vector<1x128xf32>
    %76 = arith.subf %75, %69 : vector<1x128xf32>
    %77 = arith.mulf %76, %74 : vector<1x128xf32>
    %78 = arith.mulf %69, %6 : vector<1x128xf32>
    %79 = arith.addf %77, %78 : vector<1x128xf32>
    %80 = arith.truncf %79 : vector<1x128xf32> to vector<1x128xbf16>
    %c128_37 = arith.constant 128 : index
    %c0_38 = arith.constant 0 : index
    %81 = vector.load %arg4[%c128_37, %c0_38] : memref<256x384xbf16, #tpu.memory_space<vmem>>, vector<128x384xbf16>
    %cst_39 = arith.constant dense<0.000000e+00> : vector<1x384xf32>
    %82 = tpu.matmul %80, %81, %cst_39 {dimension_numbers = #tpu.dot_dimension_numbers<[1], [0], [0], [1], [0, 0, 1, 1], [], []>} : vector<1x128xbf16>, vector<128x384xbf16>, vector<1x384xf32> -> vector<1x384xf32>
    %c3 = arith.constant 3 : index
    %c0_40 = arith.constant 0 : index
    %83 = vector.load %arg6[%c3, %c0_40] : memref<8x384xf32, #tpu.memory_space<vmem>>, vector<1x384xf32>
    %84 = arith.addf %82, %83 : vector<1x384xf32>
    %85 = vector.extract_strided_slice %84 {offsets = [0, 0], sizes = [1, 128], strides = [1, 1]} : vector<1x384xf32> to vector<1x128xf32>
    %86 = vector.extract_strided_slice %48 {offsets = [0, 0], sizes = [1, 128], strides = [1, 1]} : vector<1x384xf32> to vector<1x128xf32>
    %87 = arith.addf %85, %86 : vector<1x128xf32>
    %88 = arith.negf %87 : vector<1x128xf32>
    %89 = math.exp %88 : vector<1x128xf32>
    %cst_41 = arith.constant 1.000000e+00 : f32
    %90 = vector.broadcast %cst_41 : f32 to vector<1x128xf32>
    %91 = arith.addf %90, %89 : vector<1x128xf32>
    %92 = arith.divf %90, %91 : vector<1x128xf32>
    %93 = vector.extract_strided_slice %84 {offsets = [0, 128], sizes = [1, 128], strides = [1, 1]} : vector<1x384xf32> to vector<1x128xf32>
    %94 = vector.extract_strided_slice %48 {offsets = [0, 128], sizes = [1, 128], strides = [1, 1]} : vector<1x384xf32> to vector<1x128xf32>
    %95 = arith.addf %93, %94 : vector<1x128xf32>
    %96 = arith.negf %95 : vector<1x128xf32>
    %97 = math.exp %96 : vector<1x128xf32>
    %cst_42 = arith.constant 1.000000e+00 : f32
    %98 = vector.broadcast %cst_42 : f32 to vector<1x128xf32>
    %99 = arith.addf %98, %97 : vector<1x128xf32>
    %100 = arith.divf %98, %99 : vector<1x128xf32>
    %101 = vector.extract_strided_slice %84 {offsets = [0, 256], sizes = [1, 128], strides = [1, 1]} : vector<1x384xf32> to vector<1x128xf32>
    %102 = vector.extract_strided_slice %48 {offsets = [0, 256], sizes = [1, 128], strides = [1, 1]} : vector<1x384xf32> to vector<1x128xf32>
    %103 = arith.mulf %92, %102 : vector<1x128xf32>
    %104 = arith.addf %101, %103 : vector<1x128xf32>
    %105 = math.tanh %104 : vector<1x128xf32>
    %cst_43 = arith.constant 1.000000e+00 : f32
    %106 = vector.broadcast %cst_43 : f32 to vector<1x128xf32>
    %107 = arith.subf %106, %100 : vector<1x128xf32>
    %108 = arith.mulf %107, %105 : vector<1x128xf32>
    %109 = arith.mulf %100, %7 : vector<1x128xf32>
    %110 = arith.addf %108, %109 : vector<1x128xf32>
    %c0_44 = arith.constant 0 : index
    %c0_45 = arith.constant 0 : index
    %111 = vector.load %arg10[%c0_44, %c0_45] : memref<2x128xf32, #tpu.memory_space<vmem>>, vector<1x128xf32>
    tpu.vector_store %arg10[%c0_44, %c0_45], %79 {strides = array<i32>} : memref<2x128xf32, #tpu.memory_space<vmem>>, vector<1x128xf32>,
    %c1_46 = arith.constant 1 : index
    %c0_47 = arith.constant 0 : index
    %112 = vector.load %arg10[%c1_46, %c0_47] : memref<2x128xf32, #tpu.memory_space<vmem>>, vector<1x128xf32>
    tpu.vector_store %arg10[%c1_46, %c0_47], %110 {strides = array<i32>} : memref<2x128xf32, #tpu.memory_space<vmem>>, vector<1x128xf32>,
    %113 = arith.truncf %110 : vector<1x128xf32> to vector<1x128xbf16>
    %c512 = arith.constant 512 : index
    %c0_48 = arith.constant 0 : index
    %114 = vector.load %arg3[%c512, %c0_48] : memref<640x128xbf16, #tpu.memory_space<vmem>>, vector<128x128xbf16>
    %cst_49 = arith.constant dense<0.000000e+00> : vector<1x128xf32>
    %115 = tpu.matmul %113, %114, %cst_49 {dimension_numbers = #tpu.dot_dimension_numbers<[1], [0], [0], [1], [0, 0, 1, 1], [], []>} : vector<1x128xbf16>, vector<128x128xbf16>, vector<1x128xf32> -> vector<1x128xf32>
    %c6 = arith.constant 6 : index
    %c0_50 = arith.constant 0 : index
    %116 = vector.load %arg6[%c6, %c0_50] : memref<8x384xf32, #tpu.memory_space<vmem>>, vector<1x128xf32>
    %117 = arith.addf %115, %116 : vector<1x128xf32>
    %cst_51 = arith.constant dense<0xFF800000> : vector<1xf32>
    %118 = vector.multi_reduction <maximumf>, %117, %cst_51 [1] : vector<1x128xf32> to vector<1xf32>
    %119 = vector.shape_cast %118 : vector<1xf32> to vector<1x1xf32>
    %120 = vector.broadcast %119 : vector<1x1xf32> to vector<1x128xf32>
    %121 = arith.subf %117, %120 : vector<1x128xf32>
    %122 = math.exp %121 : vector<1x128xf32>
    %cst_52 = arith.constant dense<0.000000e+00> : vector<1xf32>
    %123 = vector.multi_reduction <add>, %122, %cst_52 [1] : vector<1x128xf32> to vector<1xf32>
    %124 = vector.shape_cast %123 : vector<1xf32> to vector<1x1xf32>
    %125 = math.log %124 : vector<1x1xf32>
    %126 = vector.broadcast %125 : vector<1x1xf32> to vector<1x128xf32>
    %127 = arith.subf %121, %126 : vector<1x128xf32>
    %c0_53 = arith.constant 0 : index
    %c0_54 = arith.constant 0 : index
    %c0_55 = arith.constant 0 : index
    %128 = vector.load %arg9[%c0_53, %c0_54, %c0_55] : memref<1x1x128xf32, #tpu.memory_space<vmem>>, vector<1x1x128xf32>
    %129 = vector.shape_cast %128 : vector<1x1x128xf32> to vector<1x128xf32>
    %130 = vector.shape_cast %127 : vector<1x128xf32> to vector<1x1x128xf32>
    tpu.vector_store %arg9[%c0_53, %c0_54, %c0_55], %130 {strides = array<i32>} : memref<1x1x128xf32, #tpu.memory_space<vmem>>, vector<1x1x128xf32>,
    return
  }
  func.func @transform_0(%arg0: i32, %arg1: memref<4xi32, #tpu.memory_space<smem>>) -> (i32, i32, i32) {
    %0 = arith.index_cast %arg0 : i32 to index
    %1 = memref.load %arg1[%0] : memref<4xi32, #tpu.memory_space<smem>>
    %c0_i32 = arith.constant 0 : i32
    %c0_i32_0 = arith.constant 0 : i32
    %c0_i32_1 = arith.constant 0 : i32
    return %1, %c0_i32, %c0_i32_0 : i32, i32, i32
  }
  func.func @transform_1(%arg0: i32, %arg1: memref<4xi32, #tpu.memory_space<smem>>) -> (i32, i32) {
    %c0_i32 = arith.constant 0 : i32
    %c0_i32_0 = arith.constant 0 : i32
    %c0_i32_1 = arith.constant 0 : i32
    return %c0_i32, %c0_i32_0 : i32, i32
  }
  func.func @transform_2(%arg0: i32, %arg1: memref<4xi32, #tpu.memory_space<smem>>) -> (i32, i32) {
    %c0_i32 = arith.constant 0 : i32
    %c0_i32_0 = arith.constant 0 : i32
    %c0_i32_1 = arith.constant 0 : i32
    return %c0_i32, %c0_i32_0 : i32, i32
  }
  func.func @transform_3(%arg0: i32, %arg1: memref<4xi32, #tpu.memory_space<smem>>) -> (i32, i32) {
    %c0_i32 = arith.constant 0 : i32
    %c0_i32_0 = arith.constant 0 : i32
    %c0_i32_1 = arith.constant 0 : i32
    return %c0_i32, %c0_i32_0 : i32, i32
  }
  func.func @transform_4(%arg0: i32, %arg1: memref<4xi32, #tpu.memory_space<smem>>) -> (i32, i32) {
    %c0_i32 = arith.constant 0 : i32
    %c0_i32_0 = arith.constant 0 : i32
    %c0_i32_1 = arith.constant 0 : i32
    return %c0_i32, %c0_i32_0 : i32, i32
  }
  func.func @transform_5(%arg0: i32, %arg1: memref<4xi32, #tpu.memory_space<smem>>) -> (i32, i32) {
    %c0_i32 = arith.constant 0 : i32
    %c0_i32_0 = arith.constant 0 : i32
    %c0_i32_1 = arith.constant 0 : i32
    return %c0_i32, %c0_i32_0 : i32, i32
  }
  func.func @transform_6(%arg0: i32, %arg1: memref<4xi32, #tpu.memory_space<smem>>) -> (i32, i32) {
    %c0_i32 = arith.constant 0 : i32
    %c0_i32_0 = arith.constant 0 : i32
    %c0_i32_1 = arith.constant 0 : i32
    return %c0_i32, %c0_i32_0 : i32, i32
  }
  func.func @transform_7(%arg0: i32, %arg1: memref<4xi32, #tpu.memory_space<smem>>) -> (i32, i32, i32) {
    %c0_i32 = arith.constant 0 : i32
    %c0_i32_0 = arith.constant 0 : i32
    %c0_i32_1 = arith.constant 0 : i32
    return %arg0, %c0_i32, %c0_i32_0 : i32, i32, i32
  }
  func.func @transform_8(%arg0: i32, %arg1: memref<4xi32, #tpu.memory_space<smem>>) -> (i32, i32) {
    %c0_i32 = arith.constant 0 : i32
    %c0_i32_0 = arith.constant 0 : i32
    %c0_i32_1 = arith.constant 0 : i32
    return %c0_i32, %c0_i32_0 : i32, i32
  }
  func.func @transform_9(%arg0: i32, %arg1: memref<4xi32, #tpu.memory_space<smem>>) -> (i32, i32, i32) {
    %c0_i32 = arith.constant 0 : i32
    %c0_i32_0 = arith.constant 0 : i32
    %c0_i32_1 = arith.constant 0 : i32
    return %arg0, %c0_i32, %c0_i32_0 : i32, i32, i32
  }
}

</mosaic_0001>

<bundles_post_ra>
// kernel: _decode_impl.1
= control target key start
LH: loop header
LB: loop body
LE: loop exit
PB: predicated region body
PF: predicated region fallthrough
CT: control target
= control target key end

     0   :  { %s2999_s16 = smov [#allocation3]   ;;  %s3467_s0 = inlined_call_operand.vmem [shape: s32[4], index: 0, kind: input, shape index: {}]   ;;  %s3468_s1 = inlined_call_operand.vmem [shape: bf16[128,1,128], index: 1, kind: input, shape index: {}]   ;;  %s3469_s2 = inlined_call_operand.vmem [shape: bf16[640,128], index: 2, kind: input, shape index: {}]   ;;  %s3470_s3 = inlined_call_operand.hbm [shape: bf16[256,384], index: 3, kind: input, shape index: {}]   ;;  %s3471_s4 = inlined_call_operand.hbm [shape: bf16[128,768], index: 4, kind: input, shape index: {}]   ;;  %s3472_s5 = inlined_call_operand.hbm [shape: f32[8,384], index: 5, kind: input, shape index: {}]   ;;  %s3473_s6 = inlined_call_operand.vmem [shape: f32[2,128], index: 6, kind: input, shape index: {}]   ;;  %s3474_s7 = inlined_call_operand.vmem [shape: f32[128,128], index: 7, kind: input, shape index: {}]   ;;  %s3475_s8 = inlined_call_operand.hbm [shape: f32[4,1,128], index: 8, kind: output, shape index: {0}]   ;;  %s3476_s9 = inlined_call_operand.hbm [shape: f32[2,128], index: 9, kind: output, shape index: {1}]   ;;  %s3477_s10 = inlined_call_operand.hbm [shape: f32[4,1,128], index: 10, kind: output, shape index: {2}]  }
   0x1   :  { %3479 = sst [smem:[#allocation20_spill]] %s3470_s3  ;;  %s17_s15 = sshll.u32 %s3467_s0, 4  ;;  %s18_s15 = int_to_ptr.vmem [resolvable:$true] %s17_s15 }
   0x2   :  { %3480 = sst [smem:[#allocation21_spill]] %s3471_s4 }
   0x3   :  { %20 = dma.vmem_to_smem %s18_s15, 16, %s2999_s16, [#allocation2] }
   0x4   :  { %2965 = dma.done.wait [#allocation2], 16 }
   0x5   :  { %2966 = vsyncadd [#allocation2], 4294967280 }
   0x6   :  { %23 = sfence }
   0x7   :  { %24 = vsyncpa [#allocation5], 0 }
   0x8   :  { %25 = vsyncpa [#allocation8], 0 }
   0x9   :  { %26 = vsyncpa [#allocation6], 0 }
   0xa   :  { %28 = vsyncpa [#allocation6 + $0x1], 0 }
   0xb   :  { %29 = vsyncpa [#allocation12], 0  ;;  %s3066_s17 = smov 0   ;;  %s3068_s18 = smov 0  }
   0xc   :  { %s3070_s19 = smov 0   ;;  %s3072_s20 = smov 0  }
   0xd LB: > { %s3085_s0 = sadd.s32 4294967295, %s2997_s20   ;;  %s3478_s21 = sadd.s32 4294967294, %s2997_s20   ;;  %s2997_s20 = sphi %s3072_s20, %s3493_s20   ;;  %s2993_s19 = sphi %s3070_s19, %s3492_s19   ;;  %s2989_s18 = sphi %s3068_s18, %s3491_s18   ;;  %s2985_s17 = sphi %s3066_s17, %s3490_s17  }
   0xe   : > { %s3089_s22 = sadd.s32 1, %s2997_s20   ;;  %s196_s23 = sadd.s32 1, %s2993_s19 }
   0xf   : > { %s193_s24 = ssub.s32 %s2997_s20, %s3089_s22  ;;  %p206_p0 = scmp.ne.s32.totalorder %s2993_s19, %s2989_s18 }
  0x10   : > { %p194_p1 = scmp.eq.s32.totalorder %s193_s24, 0  ;;  %p207_p2 = scmp.eq.s32.totalorder %s3085_s0, 3 }
  0x11   : > { %p212_p3 = scmp.ne.s32.totalorder %s2989_s18, %s2985_s17  ;;  %p213_p4 = scmp.eq.s32.totalorder %s3478_s21, 3 }
  0x12   : > { %s3101_s25 = scalar_select %p194_p1, %s2993_s19, %s196_s23  }
  0x13   : > { %p3105_p5 = por %p207_p2, %p206_p0  ;;  %p3109_p6 = por %p213_p4, %p212_p3 }
  0x14   : > { %3481 = sst [smem:[#allocation19_spill]] %s3101_s25  ;;  %p1949_p7 = scmp.ge.s32.totalorder %s2997_s20, 1 }
  0x15   : > { %p267_p8 = scmp.lt.s32.totalorder %s2997_s20, 5  ;;  %p1950_p9 = scmp.ne.s32.totalorder %s3085_s0, 0 }
  0x16   : > { %p2684_p10 = scmp.eq.s32.totalorder %s3085_s0, 0  ;;  %s3485_s4 = sld [smem:[#allocation21_spill]] }
  0x17   : > { %p3117_p11 = pnand %p1949_p7, %p267_p8  ;;  %s3000_s12 = smov [#allocation7]  }
  0x18   : > { %s297_s13 = sshll.u32 %s3000_s12, 4  ;;  %s3487_s3 = sld [smem:[#allocation20_spill]]  ;;  %s298_s13 = int_to_ptr.vmem [resolvable:$true] %s297_s13 }
  0x19   : > { %p2667_p12 = pneg %p3117_p11  ;;  %s3001_s23 = smov 384  }
  0x1a   : > { %s3002_s24 = smov 24   ;;  %s3003_s29 = smov [#allocation4]  }
  0x1b   : > { %p3128_p13 = pnand %p2684_p10, %p2667_p12  ;;  %s283_s30 = sshll.u32 %s3003_s29, 4  ;;  %s284_s30 = int_to_ptr.vmem [resolvable:$true] %s283_s30 }
  0x1c   : > { %s295_s11 = sshll.u32 %s3485_s4, 4  ;;  %s3004_s12 = smov 192   ;;  %s296_s11 = int_to_ptr.hbm [resolvable:$true] %s295_s11 }
  0x1d   : > { %2673 = dma.hbm_to_vmem [thread:$0]  (!%p3128_p13), %s296_s11, 6144, %s298_s13, [#allocation8], %s3001_s23, %s3001_s23, %s3002_s24  }
  0x1e   : > { %s281_s17 = sshll.u32 %s3487_s3, 4  ;;  %s3005_s21 = smov 12   ;;  %s282_s17 = int_to_ptr.hbm [resolvable:$true] %s281_s17 }
  0x1f   : > { %2670 = dma.hbm_to_vmem [thread:$0]  (!%p3128_p13), %s282_s17, 6144, %s284_s30, [#allocation5], %s3004_s12, %s3004_s12, %s3005_s21  }
  0x20   : > { %s310_s15 = sshll.u32 %s3472_s5, 4  ;;  %s3006_s16 = smov [#allocation9]   ;;  %s311_s15 = int_to_ptr.hbm [resolvable:$true] %s310_s15 }
  0x21   : > { %s312_s3 = sshll.u32 %s3006_s16, 4  ;;  %339 = sbr.rel (%p3117_p11) target bundleno = 1517 (0x5ed), region = 48  ;;  %s313_s3 = int_to_ptr.vmem [resolvable:$true] %s312_s3 }
  0x22   : > { %2676 = dma.hbm_to_vmem [thread:$0]  (!%p3128_p13), %s311_s15, 384, %s313_s3, [#allocation8]  }
  0x26   : > { %2968 = dma.done.wait (%p2684_p10), [#allocation5], 6144  }
  0x27   : > { %2970 = vsyncadd (%p2684_p10), [#allocation5], 4294961152 }
  0x28   : > { %2972 = dma.done.wait (%p2684_p10), [#allocation8], 6528  }
  0x29   : > { %2974 = vsyncadd (%p2684_p10), [#allocation8], 4294960768  ;;  %s378_s4 = sand.u32 1, %s2989_s18   ;;  %s388_s21 = sld [smem:[#allocation3 + %s3085_s0]] }
  0x2a   : > { %s3162_s11 = scalar_lea.vmem [#allocation10], %s378_s4  ;;  %s3164_s13 = scalar_lea.vmem [#allocation13], %s378_s4 }
  0x2e   : > { %396 = sbr.rel (%p1950_p9) target bundleno = 53 (0x35), region = 64 }
  0x2f   : > { %p389_p0 = scmp.lt.s32.totalorder %s388_s21, 127 }
  0x31   : > { %s3495_s21 = smov (!%p389_p0, %s388_s21), 127 }
  0x32   : > { %s391_s28 = scalar_lea.vmem %s3468_s1, %s3495_s21 }
  0x33   : > { %v397_v0 = vld [vmem:[%s3473_s6] sm:$0x3] }
  0x34   : > { %398 = vst [vmem:[#allocation11] sm:$0x3] %v397_v0 }
  0x35 PF: > { %v2526_v1 = vld [vmem:[%s3469_s2 + $0x78] sm:$0xff]  ;;  %v2525_v3 = vld [vmem:[%s3469_s2 + $0x70] sm:$0xff]  ;;  %v2524_v5 = vld [vmem:[%s3469_s2 + $0x68] sm:$0xff]  ;;  %vm558_vm0 = vcmask 1040384   ;;  %s3007_s16 = smov [#allocation11]   ;;  %s1815_s14 = sshll.u32 %s3476_s9, 4  ;;  %s1816_s14 = int_to_ptr.hbm [resolvable:$true] %s1815_s14 }
  0x36   : > { %v2518_v2 = vld [vmem:[%s3469_s2 + $0x38] sm:$0xff]  ;;  %482 = vmatpush.bf16.msra.mxu0 %v2526_v1  ;;  %v2517_v4 = vld [vmem:[%s3469_s2 + $0x30] sm:$0xff]  ;;  %v2516_v6 = vld [vmem:[%s3469_s2 + $0x28] sm:$0xff]  ;;  %s1813_s4 = sshll.u32 %s3007_s16, 4  ;;  %s1824_s29 = scalar_lea.hbm %s3477_s10, %s3085_s0  ;;  %s1814_s4 = int_to_ptr.vmem [resolvable:$true] %s1813_s4 }
  0x37   : > { %543 = vmatpush.bf16.msra.mxu1 %v2518_v2  ;;  %v2523_v7 = vld [vmem:[%s3469_s2 + $0x60] sm:$0xff]  ;;  %v2522_v9 = vld [vmem:[%s3469_s2 + $0x58] sm:$0xff]  ;;  %v2521_v11 = vld [vmem:[%s3469_s2 + $0x50] sm:$0xff]  ;;  %s1786_s30 = sand.u32 1, %s3085_s0   ;;  %s1801_s12 = sshll.u32 %s3162_s11, 4  ;;  %s1802_s12 = int_to_ptr.vmem [resolvable:$true] %s1801_s12 }
  0x38   : > { %v2515_v8 = vld [vmem:[%s3469_s2 + $0x20] sm:$0xff]  ;;  %v2514_v10 = vld [vmem:[%s3469_s2 + $0x18] sm:$0xff]  ;;  %v2513_v12 = vld [vmem:[%s3469_s2 + $0x10] sm:$0xff]  ;;  %s1826_s16 = sshll.u32 %s3164_s13, 4  ;;  %s3414_s3 = sshll.u32 %s1824_s29, 4  ;;  %s3416_s16 = int_to_ptr.vmem [resolvable:$true] %s1826_s16  ;;  %s1829_s3 = int_to_ptr.hbm [resolvable:$true] %s3414_s3 }
  0x39   : > { %v2520_v13 = vld [vmem:[%s3469_s2 + $0x48] sm:$0xff]  ;;  %v2519_v15 = vld [vmem:[%s3469_s2 + $0x40] sm:$0xff]  ;;  %v599_v28 = vld [vmem:[%s3474_s7 + $0x78] sm:$0xff]  ;;  %s2913_s21 = scalar_lea.hbm %s3475_s8, 4 }
  0x3a   : > { %483 = vmatpush.bf16.msra.mxu0 %v2525_v3  ;;  %v2512_v14 = vld [vmem:[%s3469_s2 + $0x8] sm:$0xff]  ;;  %v2511_v16 = vld [vmem:[%s3469_s2] sm:$0xff]  ;;  %v598_v29 = vld [vmem:[%s3474_s7 + $0x70] sm:$0xff]  ;;  %600 = vmatpush.msra.mxu2 %v599_v28 }
  0x3b   : > { %544 = vmatpush.bf16.msra.mxu1 %v2517_v4  ;;  %v400_v17 = vld [vmem:[#allocation11] sm:$0x3]  ;;  %v3226_v19 = vld [vmem:[%s391_s28] sm:$0x1]  ;;  %v597_v30 = vld [vmem:[%s3474_s7 + $0x68] sm:$0xff]  ;;  %s1799_s28 = scalar_lea.hbm %s3475_s8, %s3085_s0 }
  0x3c   : > { %v3219_v18 = vpack.c.bf16 %v400_v17, %v400_v17  ;;  %v556_v22 = vld [vmem:[#allocation9] ss:$0 sm:$0xff]  ;;  %601 = vmatpush.msra.mxu2 %v598_v29  ;;  %v595_v32 = vld [vmem:[%s3474_s7 + $0x58] sm:$0xff]  ;;  %v594_v33 = vld [vmem:[%s3474_s7 + $0x50] sm:$0xff]  ;;  %s1803_s15 = sshll.u32 %s1799_s28, 4  ;;  %s1804_s15 = int_to_ptr.hbm [resolvable:$true] %s1803_s15 }
  0x3d   : > { %v596_v31 = vld [vmem:[%s3474_s7 + $0x60] sm:$0xff]  ;;  %v593_v39 = vld [vmem:[%s3474_s7 + $0x48] sm:$0xff]  ;;  %v591_v41 = vld [vmem:[%s3474_s7 + $0x38] sm:$0xff]  ;;  %s2907_s25 = sshra.s32 %s1804_s15, 4  ;;  %s2908_s25 = int_to_ptr.hbm [resolvable:$true] %s2907_s25 }
  0x3e   : > { %484 = vmatpush.bf16.msra.mxu0 %v2524_v5  ;;  %602 = vmatpush.msra.mxu2 %v597_v30  ;;  %v592_v40 = vld [vmem:[%s3474_s7 + $0x40] sm:$0xff]  ;;  %v590_v42 = vld [vmem:[%s3474_s7 + $0x30] sm:$0xff]  ;;  %v589_v43 = vld [vmem:[%s3474_s7 + $0x28] sm:$0xff]  ;;  %p2914_p7 = scmp.lt.s32.totalorder %s2908_s25, %s3475_s8 }
  0x3f   : > { %545 = vmatpush.bf16.msra.mxu1 %v2516_v6  ;;  %v588_v44 = vld [vmem:[%s3474_s7 + $0x20] sm:$0xff]  ;;  %v587_v45 = vld [vmem:[%s3474_s7 + $0x18] sm:$0xff]  ;;  %v586_v46 = vld [vmem:[%s3474_s7 + $0x10] sm:$0xff] }
  0x40   : > { %603 = vmatpush.msra.mxu2 %v596_v31  ;;  %v585_v47 = vld [vmem:[%s3474_s7 + $0x8] sm:$0xff]  ;;  %v584_v48 = vld [vmem:[%s3474_s7] sm:$0xff]  ;;  %v2534_v49 = vld [vmem:[%s3469_s2 + $0xb8] sm:$0xff] }
  0x41   : > { %v2542_v50 = vld [vmem:[%s3469_s2 + $0xf8] sm:$0xff]  ;;  %v2533_v51 = vld [vmem:[%s3469_s2 + $0xb0] sm:$0xff]  ;;  %v2532_v53 = vld [vmem:[%s3469_s2 + $0xa8] sm:$0xff] }
  0x42   : > { %485 = vmatpush.bf16.msra.mxu0 %v2523_v7  ;;  %604 = vmatpush.msra.mxu2 %v595_v32  ;;  %v2541_v52 = vld [vmem:[%s3469_s2 + $0xf0] sm:$0xff]  ;;  %v2540_v54 = vld [vmem:[%s3469_s2 + $0xe8] sm:$0xff]  ;;  %v2531_v55 = vld [vmem:[%s3469_s2 + $0xa0] sm:$0xff] }
  0x43   : > { %546 = vmatpush.bf16.msra.mxu1 %v2515_v8  ;;  %701 = vmatpush.bf16.msra.mxu3 %v2542_v50  ;;  %v2539_v56 = vld [vmem:[%s3469_s2 + $0xe0] sm:$0xff]  ;;  %v2530_v58 = vld [vmem:[%s3469_s2 + $0x98] sm:$0xff]  ;;  %v2529_v60 = vld [vmem:[%s3469_s2 + $0x90] sm:$0xff] }
  0x44   : > { %605 = vmatpush.msra.mxu2 %v594_v33  ;;  %v2538_v59 = vld [vmem:[%s3469_s2 + $0xd8] sm:$0xff]  ;;  %v2537_v61 = vld [vmem:[%s3469_s2 + $0xd0] sm:$0xff]  ;;  %v2528_v1 = vld [vmem:[%s3469_s2 + $0x88] sm:$0xff] }
  0x45   : > { %v2536_v2 = vld [vmem:[%s3469_s2 + $0xc8] sm:$0xff]  ;;  %v2527_v7 = vld [vmem:[%s3469_s2 + $0x80] sm:$0xff]  ;;  %v2582_v17 = vld [vmem:[#allocation7 + $0x134] sm:$0xf0] }
  0x46   : > { %486 = vmatpush.bf16.msra.mxu0 %v2522_v9  ;;  %606 = vmatpush.msra.mxu2 %v593_v39  ;;  %v2185_v28 = vld [vmem:[#allocation7 + $0xc0] sm:$0xf]  ;;  %v2241_v30 = vld [vmem:[#allocation7 + $0x128] sm:$0xf]  ;;  %v2570_v32 = vld [vmem:[#allocation7 + $0xd4] sm:$0xf0] }
  0x47   : > { %547 = vmatpush.bf16.msra.mxu1 %v2514_v10  ;;  %702 = vmatpush.bf16.msra.mxu3 %v2541_v52  ;;  %v2583_v31 = vld [vmem:[#allocation7 + $0x13c] sm:$0xf0]  ;;  %v2574_v39 = vld [vmem:[#allocation7 + $0xfc] sm:$0xf]  ;;  %v2558_v52 = vld [vmem:[#allocation7 + $0x74] sm:$0xf0] }
  0x48   : > { %607 = vmatpush.msra.mxu2 %v592_v40  ;;  %v2242_v33 = vor.u32 %v2583_v31, %v2241_v30  ;;  %v2219_v40 = vld [vmem:[#allocation7 + $0x110] sm:$0xf0]  ;;  %v2547_v30 = vld [vmem:[#allocation7 + $0x1c] sm:$0xf0]  ;;  %v2544_v31 = vld [vmem:[#allocation7 + $0xc] sm:$0xf] }
  0x4a   : > { %487 = vmatpush.bf16.msra.mxu0 %v2521_v11  ;;  %608 = vmatpush.msra.mxu2 %v591_v41  ;;  %v2186_v41 = vor.u32 %v2570_v32, %v2185_v28  ;;  %v2099_v32 = vld [vmem:[#allocation7 + $0x20] sm:$0xf0] }
  0x4b   : > { %548 = vmatpush.bf16.msra.mxu1 %v2513_v12  ;;  %703 = vmatpush.bf16.msra.mxu3 %v2540_v54  ;;  %v2535_v12 = vld [vmem:[%s3469_s2 + $0xc0] sm:$0xff] }
  0x4c   : > { %609 = vmatpush.msra.mxu2 %v590_v42  ;;  %v2161_v42 = vld [vmem:[#allocation7 + $0x90] sm:$0xf] }
  0x4e   : > { %488 = vmatpush.bf16.msra.mxu0 %v2520_v13  ;;  %610 = vmatpush.msra.mxu2 %v589_v43  ;;  %v2257_v13 = vld [vmem:[#allocation7 + $0x150] sm:$0xf]  ;;  %v2564_v43 = vld [vmem:[#allocation7 + $0xa4] sm:$0xf0] }
  0x4f   : > { %549 = vmatpush.bf16.msra.mxu1 %v2512_v14  ;;  %704 = vmatpush.bf16.msra.mxu3 %v2539_v56  ;;  %v2588_v14 = vld [vmem:[#allocation7 + $0x164] sm:$0xf0]  ;;  %v2162_v50 = vor.u32 %v2564_v43, %v2161_v42  ;;  %v2565_v56 = vld [vmem:[#allocation7 + $0xac] sm:$0xf0]  ;;  %v2225_v42 = vld [vmem:[#allocation7 + $0x100] sm:$0xf] }
  0x50   : > { %611 = vmatpush.msra.mxu2 %v588_v44  ;;  %v2578_v43 = vld [vmem:[#allocation7 + $0x114] sm:$0xf0] }
  0x52   : > { %489 = vmatpush.bf16.msra.mxu0 %v2519_v15  ;;  %612 = vmatpush.msra.mxu2 %v587_v45  ;;  %v2233_v15 = vld [vmem:[#allocation7 + $0x120] sm:$0xf]  ;;  %v2222_v45 = vor.u32 %v2574_v39, %v2219_v40  ;;  %v2367_v39 = vld [vmem:[#allocation4 + $0xb4] sm:$0xf0] }
  0x53   : > { %550 = vmatpush.bf16.msra.mxu1 %v2511_v16  ;;  %705 = vmatpush.bf16.msra.mxu3 %v2538_v59  ;;  %v2258_v16 = vor.u32 %v2588_v14, %v2257_v13  ;;  %v2273_v13 = vld [vmem:[#allocation7 + $0x160] sm:$0xf]  ;;  %v2590_v14 = vld [vmem:[#allocation7 + $0x174] sm:$0xf0] }
  0x54   : > { %613 = vmatpush.msra.mxu2 %v586_v46  ;;  %v2193_v46 = vld [vmem:[#allocation7 + $0xc8] sm:$0xf] }
  0x55   : > { %490 = vmatmul.bf16.vlgmr.msra.gmra.mxu0 %v3219_v18 }
  0x56   : > { %551 = vmatmul.bf16.vlgmr.msra.gmra.mxu1 %v3226_v19  ;;  %614 = vmatpush.msra.mxu2 %v585_v47  ;;  %v2571_v47 = vld [vmem:[#allocation7 + $0xdc] sm:$0xf0] }
  0x57   : > { %762 = vmatpush.bf16.msrb.mxu0 %v2534_v49  ;;  %706 = vmatpush.bf16.msra.mxu3 %v2537_v61  ;;  %v2195_v49 = vld [vmem:[#allocation7 + $0xe0] sm:$0xf0]  ;;  %v2552_v61 = vld [vmem:[#allocation7 + $0x44] sm:$0xf0] }
  0x58   : > { %615 = vmatpush.msra.mxu2 %v584_v48  ;;  %1066 = vmatpush.bf16.msrb.mxu1 %v2258_v16  ;;  %v2568_v48 = vld [vmem:[#allocation7 + $0xcc] sm:$0xf]  ;;  %v2121_v16 = vld [vmem:[#allocation7 + $0x38] sm:$0xf] }
  0x59   : > { %v2198_v54 = vor.u32 %v2568_v48, %v2195_v49 }
  0x5b   : > { %763 = vmatpush.bf16.msrb.mxu0 %v2533_v51  ;;  %707 = vmatpush.bf16.msra.mxu3 %v2536_v2  ;;  %v2137_v51 = vld [vmem:[#allocation7 + $0x60] sm:$0xf]  ;;  %v2145_v2 = vld [vmem:[#allocation7 + $0x68] sm:$0xf] }
  0x5c   : > { %v2138_v59 = vor.u32 %v2558_v52, %v2137_v51  ;;  %v2610_v51 = vld [vmem:[#allocation4 + $0x98] sm:$0xf0]  ;;  %v2609_v52 = vld [vmem:[#allocation4 + $0x94] sm:$0xf] }
  0x5f   : > { %764 = vmatpush.bf16.msrb.mxu0 %v2532_v53  ;;  %708 = vmatpush.bf16.msra.mxu3 %v2535_v12  ;;  %v2194_v53 = vor.u32 %v2571_v47, %v2193_v46  ;;  %v2235_v12 = vld [vmem:[#allocation7 + $0x138] sm:$0xf0]  ;;  %v2567_v46 = vld [vmem:[#allocation7 + $0xc4] sm:$0xf] }
  0x60   : > { %v2187_v47 = vld [vmem:[#allocation7 + $0xd8] sm:$0xf0] }
  0x63   : > { %765 = vmatpush.bf16.msrb.mxu0 %v2531_v55  ;;  %v2169_v55 = vld [vmem:[#allocation7 + $0x98] sm:$0xf] }
  0x67   : > { %766 = vmatpush.bf16.msrb.mxu0 %v2530_v58  ;;  %v2171_v58 = vld [vmem:[#allocation7 + $0xb0] sm:$0xf0] }
  0x6b   : > { %767 = vmatpush.bf16.msrb.mxu0 %v2529_v60  ;;  %v2113_v60 = vld [vmem:[#allocation7 + $0x30] sm:$0xf] }
  0x6f   : > { %768 = vmatpush.bf16.msrb.mxu0 %v2528_v1 }
  0x73   : > { %769 = vmatpush.bf16.msrb.mxu0 %v2527_v7  ;;  %v2114_v7 = vor.u32 %v2552_v61, %v2113_v60 }
  0x76   : > { %770 = vmatmul.bf16.vlgmr.msrb.gmra.mxu0 %v3226_v19 }
  0xd2   : > { %v491_v20 = vpop.f32.mrf.mxu0 }
  0xd3   : > { %v552_v21 = vpop.f32.mrf.mxu1 }
  0xd4   : > { %v553_v23 = vadd.f32 %v552_v21, %v491_v20  ;;  %v2234_v20 = vor.u32 %v2582_v17, %v2233_v15  ;;  %v2209_v21 = vld [vmem:[#allocation7 + $0xf0] sm:$0xf] }
  0xd6   : > { %v557_v24 = vadd.f32 %v556_v22, %v553_v23  ;;  %v2576_v22 = vld [vmem:[#allocation7 + $0x104] sm:$0xf0]  ;;  %v2265_v23 = vld [vmem:[#allocation7 + $0x158] sm:$0xf]  ;;  %1067 = vmatpush.bf16.msrb.mxu1 %v2234_v20  ;;  %v2553_v20 = vld [vmem:[#allocation7 + $0x4c] sm:$0xf0] }
  0xd7   : > { %v2210_v19 = vor.u32 %v2576_v22, %v2209_v21  ;;  %v2550_v21 = vld [vmem:[#allocation7 + $0x3c] sm:$0xf]  ;;  %v2123_v22 = vld [vmem:[#allocation7 + $0x50] sm:$0xf0]  ;;  %v2122_v28 = vor.u32 %v2553_v20, %v2121_v16  ;;  %v2560_v20 = vld [vmem:[#allocation7 + $0x84] sm:$0xf0] }
  0xd8   : > { %v559_v25 = vsel %vm558_vm0, %v557_v24, -inf }
  0xd9   : > { %560 = vmax.xlane.f32.xlu0 %v559_v25 }
  0xda   : > { %v493_v26 = vpop.f32.mrf.mxu0  ;;  %1068 = vmatpush.bf16.msrb.mxu1 %v2210_v19 }
  0xdb   : > { %v554_v27 = vpop.f32.mrf.mxu1  ;;  %v2586_v26 = vld [vmem:[#allocation7 + $0x15c] sm:$0xf] }
  0xdc   : > { %v2267_v27 = vld [vmem:[#allocation7 + $0x170] sm:$0xf0] }
  0xdd   : > { %v2270_v29 = vor.u32 %v2586_v26, %v2267_v27  ;;  %v2584_v26 = vld [vmem:[#allocation7 + $0x144] sm:$0xf0] }
  0xde   : > { %1069 = vmatpush.bf16.msrb.mxu1 %v2186_v41  ;;  %v2097_v27 = vld [vmem:[#allocation7 + $0x8] sm:$0xf] }
  0xdf   : > { %1105 = vmatpush.bf16.msra.mxu0 %v2270_v29  ;;  %v2126_v29 = vor.u32 %v2550_v21, %v2123_v22  ;;  %v2549_v21 = vld [vmem:[#allocation7 + $0x34] sm:$0xf]  ;;  %v2115_v22 = vld [vmem:[#allocation7 + $0x48] sm:$0xf0] }
  0xe2   : > { %1070 = vmatpush.bf16.msrb.mxu1 %v2162_v50  ;;  %v2353_v50 = vld [vmem:[#allocation4 + $0x90] sm:$0xf] }
  0xe3   : > { %v2354_v60 = vor.u32 %v2610_v51, %v2353_v50  ;;  %v2349_v51 = vld [vmem:[#allocation4 + $0x80] sm:$0xf] }
  0xe6   : > { %1071 = vmatpush.bf16.msrb.mxu1 %v2138_v59  ;;  %v2163_v59 = vld [vmem:[#allocation7 + $0xa8] sm:$0xf0] }
  0xea   : > { %1072 = vmatpush.bf16.msrb.mxu1 %v2114_v7  ;;  %v2555_v7 = vld [vmem:[#allocation7 + $0x64] sm:$0xf] }
 0x14c   : > { %v561_v34 = vpop.xlane.xlu0 %560 }
 0x14d   : > { %v562_v35 = vsub.f32 %v557_v24, %v561_v34  ;;  %v2589_v24 = vld [vmem:[#allocation7 + $0x16c] sm:$0xf0]  ;;  %v2580_v34 = vld [vmem:[#allocation7 + $0x12c] sm:$0xf] }
 0x14e   : > { %v2266_v25 = vor.u32 %v2589_v24, %v2265_v23  ;;  %v2274_v24 = vor.u32 %v2590_v14, %v2273_v13  ;;  %v2603_v13 = vld [vmem:[#allocation4 + $0x64] sm:$0xf]  ;;  %v2331_v14 = vld [vmem:[#allocation4 + $0x6c] sm:$0xf0] }
 0x14f   : > { %v563_v36 = vmul.f32 1.442695, %v562_v35  ;;  %v2243_v35 = vld [vmem:[#allocation7 + $0x140] sm:$0xf0] }
 0x150   : > { %1092 = vmatpush.bf16.msrb.mxu3 %v2266_v25  ;;  %v2249_v25 = vld [vmem:[#allocation7 + $0x130] sm:$0xf] }
 0x151   : > { %2734 = vpow2.f32 %v563_v36  ;;  %v2246_v36 = vor.u32 %v2580_v34, %v2243_v35  ;;  %v2365_v34 = vld [vmem:[#allocation4 + $0xa8] sm:$0xf]  ;;  %v2573_v35 = vld [vmem:[#allocation7 + $0xf4] sm:$0xf]  ;;  %v2250_v41 = vor.u32 %v2584_v26, %v2249_v25 }
 0x152   : > { %v2317_v25 = vld [vmem:[#allocation4 + $0x48] sm:$0xf]  ;;  %v2601_v26 = vld [vmem:[#allocation4 + $0x50] sm:$0xf0] }
 0x153   : > { %1106 = vmatpush.bf16.msra.mxu0 %v2246_v36  ;;  %v2211_v36 = vld [vmem:[#allocation7 + $0x108] sm:$0xf0] }
 0x154   : > { %1093 = vmatpush.bf16.msrb.mxu3 %v2242_v33  ;;  %v2214_v40 = vor.u32 %v2573_v35, %v2211_v36  ;;  %v2305_v35 = vld [vmem:[#allocation4 + $0x30] sm:$0xf]  ;;  %v2598_v36 = vld [vmem:[#allocation4 + $0x38] sm:$0xf0] }
 0x157   : > { %v3249_v37 = vpop.eup %2734  ;;  %1107 = vmatpush.bf16.msra.mxu0 %v2222_v45  ;;  %v2102_v45 = vor.u32 %v2544_v31, %v2099_v32  ;;  %v2554_v31 = vld [vmem:[#allocation7 + $0x54] sm:$0xf0] }
 0x158   : > { %v565_v38 = vsel %vm558_vm0, %v3249_v37, 0.0 }
 0x159   : > { %566 = vadd.xlane.f32.xlu0 %v565_v38  ;;  %v2577_v38 = vld [vmem:[#allocation7 + $0x10c] sm:$0xf0] }
 0x15b   : > { %1108 = vmatpush.bf16.msra.mxu0 %v2198_v54  ;;  %v2190_v54 = vor.u32 %v2567_v46, %v2187_v47 }
 0x1cc   : > { %v567_v57 = vpop.xlane.xlu0 %566 }
 0x1cd   : > { %2736 = vrcp.f32 %v567_v57  ;;  %v579_v3 = vand.u32 2147483648, %v567_v57  ;;  %v577_v5 = vand.u32 2147483647, %v567_v57  ;;  %vm573_vm2 = vweird.f32 %v567_v57 }
 0x1cf   : > { %v580_v8 = vor.u32 1.1754944e-38, %v579_v3  ;;  %vm578_vm4 = vcmp.eq.f32.partialorder %v577_v5, 8.507059e+37  ;;  %v2559_v3 = vld [vmem:[#allocation7 + $0x7c] sm:$0xf0]  ;;  %v2556_v5 = vld [vmem:[#allocation7 + $0x6c] sm:$0xf] }
 0x1d3   : > { %v2737_v62 = vpop.eup %2736 }
 0x1d4   : > { %v569_v63 = vmul.f32 %v2737_v62, %v567_v57  ;;  %vm574_vm1 = vweird.f32 %v2737_v62  ;;  %v2562_v57 = vld [vmem:[#allocation7 + $0x9c] sm:$0xf] }
 0x1d5   : > { %vm575_vm3 = vmor %vm573_vm2, %vm574_vm1  ;;  %v2174_v1 = vor.u32 %v2562_v57, %v2171_v58  ;;  %v2572_v57 = vld [vmem:[#allocation7 + $0xe4] sm:$0xf0]  ;;  %v2561_v58 = vld [vmem:[#allocation7 + $0x94] sm:$0xf] }
 0x1d6   : > { %v570_v0 = vsub.f32 1.0, %v569_v63  ;;  %v2585_v63 = vld [vmem:[#allocation7 + $0x154] sm:$0xf] }
 0x1d7   : > { %1109 = vmatpush.bf16.msra.mxu0 %v2174_v1  ;;  %v2343_v1 = vld [vmem:[#allocation4 + $0x84] sm:$0xf0] }
 0x1d8   : > { %v571_v4 = vmul.f32 %v2737_v62, %v570_v0  ;;  %v2259_v0 = vld [vmem:[#allocation7 + $0x168] sm:$0xf0] }
 0x1da   : > { %v572_v6 = vadd.f32 %v2737_v62, %v571_v4  ;;  %v2262_v4 = vor.u32 %v2585_v63, %v2259_v0  ;;  %v2607_v63 = vld [vmem:[#allocation4 + $0x80] sm:$0xf0]  ;;  %v2606_v0 = vld [vmem:[#allocation4 + $0x7c] sm:$0xf] }
 0x1dc   : > { %v576_v9 = vsel %vm575_vm3, %v2737_v62, %v572_v6  ;;  %v2170_v62 = vor.u32 %v2565_v56, %v2169_v55  ;;  %v2147_v6 = vld [vmem:[#allocation7 + $0x80] sm:$0xf0]  ;;  %1079 = vmatpush.bf16.msrb.mxu2 %v2262_v4  ;;  %v2226_v55 = vor.u32 %v2578_v43, %v2225_v42  ;;  %v2201_v56 = vld [vmem:[#allocation7 + $0xd0] sm:$0xf]  ;;  %v2177_v4 = vld [vmem:[#allocation7 + $0xa0] sm:$0xf] }
 0x1dd   : > { %v581_v10 = vsel %vm578_vm4, %v580_v8, %v576_v9  ;;  %v2089_v8 = vld [vmem:[#allocation7] sm:$0xf]  ;;  %v2546_v9 = vld [vmem:[#allocation7 + $0x14] sm:$0xf0]  ;;  %v2150_v15 = vor.u32 %v2556_v5, %v2147_v6  ;;  %v3336_v6 = vpop.f32.mrf.mxu0  ;;  %v2373_v42 = vld [vmem:[#allocation4 + $0xb0] sm:$0xf] }
 0x1de   : > { %v582_v11 = vmul.f32 %v3249_v37, %v581_v10  ;;  %v2217_v37 = vld [vmem:[#allocation7 + $0xf8] sm:$0xf]  ;;  %v2146_v10 = vor.u32 %v2559_v3, %v2145_v2  ;;  %v2090_v23 = vor.u32 %v2546_v9, %v2089_v8  ;;  %v2166_v2 = vor.u32 %v2561_v58, %v2163_v59  ;;  %v2139_v8 = vld [vmem:[#allocation7 + $0x78] sm:$0xf0] }
 0x1df   : > { %v2218_v44 = vor.u32 %v2577_v38, %v2217_v37  ;;  %1110 = vmatpush.bf16.msra.mxu0 %v2150_v15  ;;  %v2613_v37 = vld [vmem:[#allocation4 + $0xb0] sm:$0xf0]  ;;  %v2612_v38 = vld [vmem:[#allocation4 + $0xac] sm:$0xf]  ;;  %v2202_v3 = vor.u32 %v2572_v57, %v2201_v56  ;;  %v2566_v5 = vld [vmem:[#allocation7 + $0xb4] sm:$0xf0]  ;;  %v2142_v15 = vor.u32 %v2555_v7, %v2139_v8 }
 0x1e0   : > { %583 = vst [vmem:[%s3164_s13] sm:$0x1] %v582_v11  ;;  %616 = vmatmul.f32.vlgmr.msra.gmra.mxu2 %v582_v11  ;;  %v2579_v11 = vld [vmem:[#allocation7 + $0x124] sm:$0xf]  ;;  %1073 = vmatpush.bf16.msrb.mxu1 %v2090_v23  ;;  %v2366_v48 = vor.u32 %v2613_v37, %v2365_v34  ;;  %v2370_v49 = vor.u32 %v2612_v38, %v2367_v39  ;;  %v2597_v37 = vld [vmem:[#allocation4 + $0x34] sm:$0xf] }
 0x1e1   : > { %1094 = vmatpush.bf16.msrb.mxu3 %v2218_v44  ;;  %v2238_v17 = vor.u32 %v2579_v11, %v2235_v12  ;;  %v2098_v44 = vor.u32 %v2547_v30, %v2097_v27  ;;  %v2329_v11 = vld [vmem:[#allocation4 + $0x60] sm:$0xf]  ;;  %v2604_v12 = vld [vmem:[#allocation4 + $0x68] sm:$0xf0]  ;;  %v2178_v16 = vor.u32 %v2566_v5, %v2177_v4  ;;  %v2614_v43 = vld [vmem:[#allocation4 + $0xb8] sm:$0xf0] }
 0x1e2   : > { %v2330_v23 = vor.u32 %v2604_v12, %v2329_v11  ;;  %v2600_v27 = vld [vmem:[#allocation4 + $0x4c] sm:$0xf]  ;;  %v2129_v30 = vld [vmem:[#allocation7 + $0x40] sm:$0xf]  ;;  %v2374_v47 = vor.u32 %v2614_v43, %v2373_v42  ;;  %v2325_v57 = vld [vmem:[#allocation4 + $0x50] sm:$0xf] }
 0x1e3   : > { %1080 = vmatpush.bf16.msrb.mxu2 %v2238_v17  ;;  %1111 = vmatpush.bf16.msra.mxu0 %v2126_v29  ;;  %v2153_v17 = vld [vmem:[#allocation7 + $0x70] sm:$0xf]  ;;  %v2307_v38 = vld [vmem:[#allocation4 + $0x3c] sm:$0xf0]  ;;  %v2130_v39 = vor.u32 %v2554_v31, %v2129_v30  ;;  %v2602_v58 = vld [vmem:[#allocation4 + $0x58] sm:$0xf0] }
 0x1e4   : > { %1118 = vmatpush.bf16.msra.mxu1 %v2274_v24  ;;  %v2334_v24 = vor.u32 %v2603_v13, %v2331_v14  ;;  %v2154_v29 = vor.u32 %v2560_v20, %v2153_v17  ;;  %v2326_v59 = vor.u32 %v2602_v58, %v2325_v57  ;;  %v2594_v4 = vld [vmem:[#allocation4 + $0x1c] sm:$0xf]  ;;  %v2295_v7 = vld [vmem:[#allocation4 + $0x24] sm:$0xf0]  ;;  %v2301_v8 = vld [vmem:[#allocation4 + $0x20] sm:$0xf] }
 0x1e5   : > { %1095 = vmatpush.bf16.msrb.mxu3 %v2194_v53  ;;  %1074 = vmatmul.bf16.vlgmr.msrb.gmra.mxu1 %v3219_v18  ;;  %v2355_v53 = vld [vmem:[#allocation4 + $0x9c] sm:$0xf0]  ;;  %v773_v32 = vpop.f32.mrf.mxu0  ;;  %v2592_v13 = vld [vmem:[#allocation4 + $0x8] sm:$0xf0]  ;;  %v2591_v14 = vld [vmem:[#allocation4 + $0x4] sm:$0xf] }
 0x1e6   : > { %v2358_v61 = vor.u32 %v2609_v52, %v2355_v53  ;;  %v2608_v52 = vld [vmem:[#allocation4 + $0x88] sm:$0xf0]  ;;  %v2281_v12 = vld [vmem:[#allocation4] sm:$0xf]  ;;  %v2289_v17 = vld [vmem:[#allocation4 + $0x8] sm:$0xf] }
 0x1e7   : > { %1081 = vmatpush.bf16.msrb.mxu2 %v2214_v40  ;;  %1112 = vmatpush.bf16.msra.mxu0 %v2102_v45  ;;  %v2105_v40 = vld [vmem:[#allocation7 + $0x10] sm:$0xf]  ;;  %v2310_v45 = vor.u32 %v2597_v37, %v2307_v38  ;;  %v2350_v53 = vor.u32 %v2608_v52, %v2349_v51  ;;  %v2593_v20 = vld [vmem:[#allocation4 + $0x10] sm:$0xf0]  ;;  %v2575_v43 = vld [vmem:[#allocation7 + $0x104] sm:$0xf] }
 0x1e8   : > { %1119 = vmatpush.bf16.msra.mxu1 %v2250_v41  ;;  %v2548_v41 = vld [vmem:[#allocation7 + $0x24] sm:$0xf0]  ;;  %v2179_v51 = vld [vmem:[#allocation7 + $0xb8] sm:$0xf0] }
 0x1e9   : > { %1096 = vmatpush.bf16.msrb.mxu3 %v2170_v62  ;;  %v2341_v62 = vld [vmem:[#allocation4 + $0x78] sm:$0xf]  ;;  %v2106_v46 = vor.u32 %v2548_v41, %v2105_v40  ;;  %v2251_v40 = vld [vmem:[#allocation7 + $0x148] sm:$0xf0]  ;;  %v2131_v57 = vld [vmem:[#allocation7 + $0x58] sm:$0xf0] }
 0x1ea   : > { %1113 = vmatmul.bf16.vlgmr.msra.gmra.mxu0 %v3219_v18  ;;  %v2342_v9 = vor.u32 %v2607_v63, %v2341_v62  ;;  %v2543_v63 = vld [vmem:[#allocation7 + $0x4] sm:$0xf] }
 0x1eb   : > { %1351 = vmatpush.bf16.msrb.mxu0 %v2370_v49  ;;  %1082 = vmatpush.bf16.msrb.mxu2 %v2190_v54  ;;  %v2611_v49 = vld [vmem:[#allocation4 + $0xa0] sm:$0xf0]  ;;  %v2337_v54 = vld [vmem:[#allocation4 + $0x68] sm:$0xf] }
 0x1ec   : > { %1120 = vmatpush.bf16.msra.mxu1 %v2226_v55  ;;  %v2605_v55 = vld [vmem:[#allocation4 + $0x70] sm:$0xf0] }
 0x1ed   : > { %1097 = vmatpush.bf16.msrb.mxu3 %v2146_v10  ;;  %v2346_v10 = vor.u32 %v2606_v0, %v2343_v1  ;;  %v2338_v56 = vor.u32 %v2605_v55, %v2337_v54  ;;  %v2091_v0 = vld [vmem:[#allocation7 + $0x18] sm:$0xf0]  ;;  %v2155_v54 = vld [vmem:[#allocation7 + $0x88] sm:$0xf0] }
 0x1ee   : > { %v2094_v1 = vor.u32 %v2543_v63, %v2091_v0  ;;  %v2637_v63 = vld [vmem:[#allocation4 + $0x170] sm:$0xf0]  ;;  %v2636_v0 = vld [vmem:[#allocation4 + $0x16c] sm:$0xf] }
 0x1ef   : > { %1352 = vmatpush.bf16.msrb.mxu0 %v2358_v61  ;;  %1083 = vmatpush.bf16.msrb.mxu2 %v2166_v2  ;;  %v2599_v61 = vld [vmem:[#allocation4 + $0x40] sm:$0xf0]  ;;  %v2293_v2 = vld [vmem:[#allocation4 + $0x18] sm:$0xf] }
 0x1f0   : > { %1121 = vmatpush.bf16.msra.mxu1 %v2202_v3  ;;  %v2595_v3 = vld [vmem:[#allocation4 + $0x20] sm:$0xf0] }
 0x1f1   : > { %1098 = vmatpush.bf16.msrb.mxu3 %v2122_v28  ;;  %v2118_v28 = vor.u32 %v2549_v21, %v2115_v22  ;;  %v2294_v5 = vor.u32 %v2595_v3, %v2293_v2  ;;  %v2290_v22 = vor.u32 %v2593_v20, %v2289_v17  ;;  %v2465_v2 = vld [vmem:[#allocation4 + $0x174] sm:$0xf0]  ;;  %v2471_v3 = vld [vmem:[#allocation4 + $0x170] sm:$0xf]  ;;  %v2635_v17 = vld [vmem:[#allocation4 + $0x160] sm:$0xf0] }
 0x1f3   : > { %1353 = vmatpush.bf16.msrb.mxu0 %v2346_v10  ;;  %1084 = vmatpush.bf16.msrb.mxu2 %v2142_v15  ;;  %v2298_v10 = vor.u32 %v2594_v4, %v2295_v7  ;;  %v2282_v15 = vor.u32 %v2592_v13, %v2281_v12  ;;  %v2638_v4 = vld [vmem:[#allocation4 + $0x178] sm:$0xf0]  ;;  %v2468_v7 = vor.u32 %v2636_v0, %v2465_v2  ;;  %v2633_v13 = vld [vmem:[#allocation4 + $0x154] sm:$0xf] }
 0x1f4   : > { %1122 = vmatpush.bf16.msra.mxu1 %v2178_v16  ;;  %v2283_v16 = vld [vmem:[#allocation4 + $0xc] sm:$0xf0]  ;;  %v2634_v12 = vld [vmem:[#allocation4 + $0x158] sm:$0xf0]  ;;  %v2621_v0 = vld [vmem:[#allocation4 + $0xf4] sm:$0xf] }
 0x1f5   : > { %1099 = vmatpush.bf16.msrb.mxu3 %v2098_v44  ;;  %v2306_v44 = vor.u32 %v2598_v36, %v2305_v35  ;;  %v2286_v21 = vor.u32 %v2591_v14, %v2283_v16  ;;  %v2459_v16 = vld [vmem:[#allocation4 + $0x158] sm:$0xf] }
 0x1f7   : > { %1354 = vmatpush.bf16.msrb.mxu0 %v2334_v24  ;;  %1085 = vmatpush.bf16.msrb.mxu2 %v2118_v28 }
 0x1f8   : > { %1123 = vmatpush.bf16.msra.mxu1 %v2154_v29 }
 0x1fb   : > { %1086 = vmatpush.bf16.msrb.mxu2 %v2094_v1 }
 0x1fc   : > { %1124 = vmatpush.bf16.msra.mxu1 %v2130_v39  ;;  %v2581_v39 = vld [vmem:[#allocation7 + $0x134] sm:$0xf] }
 0x1fd   : > { %v2254_v41 = vor.u32 %v2581_v39, %v2251_v40  ;;  %v2427_v40 = vld [vmem:[#allocation4 + $0x120] sm:$0xf] }
 0x1fe   : > { %1087 = vmatmul.bf16.vlgmr.msrb.gmra.mxu2 %v3219_v18 }
 0x200   : > { %1125 = vmatpush.bf16.msra.mxu1 %v2106_v46  ;;  %v2569_v46 = vld [vmem:[#allocation7 + $0xd4] sm:$0xf] }
 0x203   : > { %1126 = vmatmul.bf16.vlgmr.msra.gmra.mxu1 %v3219_v18 }
 0x204   : > { %1364 = vmatpush.bf16.msrb.mxu1 %v2374_v47  ;;  %v2203_v47 = vld [vmem:[#allocation7 + $0xe8] sm:$0xf0] }
 0x263   : > { %v617_v19 = vpop.f32.mrf.mxu2 }
 0x264   : > { %v636_v33 = vpack.c.bf16 %v617_v19, %v617_v19  ;;  %v2319_v19 = vld [vmem:[#allocation4 + $0x54] sm:$0xf0] }
 0x265   : > { %v2322_v34 = vor.u32 %v2600_v27, %v2319_v19  ;;  %v2587_v27 = vld [vmem:[#allocation7 + $0x164] sm:$0xf]  ;;  %v2275_v19 = vld [vmem:[#allocation7 + $0x178] sm:$0xf0] }
 0x266   : > { %709 = vmatmul.bf16.vlgmr.msra.gmra.mxu3 %v636_v33  ;;  %v2318_v33 = vor.u32 %v2601_v26, %v2317_v25  ;;  %v775_v25 = vld [vmem:[#allocation9 + $0x1] ss:$0 sm:$0xff]  ;;  %v2278_v29 = vor.u32 %v2587_v27, %v2275_v19  ;;  %v2630_v27 = vld [vmem:[#allocation4 + $0x13c] sm:$0xf] }
 0x267   : > { %1338 = vmatpush.bf16.msra.mxu3 %v2366_v48  ;;  %1355 = vmatpush.bf16.msrb.mxu0 %v2322_v34  ;;  %v2361_v48 = vld [vmem:[#allocation4 + $0x98] sm:$0xf]  ;;  %v3344_v28 = vpop.f32.mrf.mxu0 }
 0x268   : > { %v2362_v50 = vor.u32 %v2611_v49, %v2361_v48  ;;  %1131 = vmatpush.bf16.msra.mxu2 %v2278_v29  ;;  %v2206_v48 = vor.u32 %v2569_v46, %v2203_v47  ;;  %v2629_v46 = vld [vmem:[#allocation4 + $0x130] sm:$0xf0] }
 0x26a   : > { %1365 = vmatpush.bf16.msrb.mxu1 %v2362_v50  ;;  %v2563_v50 = vld [vmem:[#allocation7 + $0xa4] sm:$0xf] }
 0x26b   : > { %1339 = vmatpush.bf16.msra.mxu3 %v2354_v60  ;;  %1356 = vmatpush.bf16.msrb.mxu0 %v2310_v45  ;;  %v2313_v60 = vld [vmem:[#allocation4 + $0x38] sm:$0xf]  ;;  %v2182_v52 = vor.u32 %v2563_v50, %v2179_v51 }
 0x26c   : > { %v2314_v62 = vor.u32 %v2599_v61, %v2313_v60  ;;  %1132 = vmatpush.bf16.msra.mxu2 %v2254_v41  ;;  %v2107_v60 = vld [vmem:[#allocation7 + $0x28] sm:$0xf0] }
 0x26d   : > { %v2628_v41 = vld [vmem:[#allocation4 + $0x128] sm:$0xf0] }
 0x26e   : > { %1366 = vmatpush.bf16.msrb.mxu1 %v2350_v53  ;;  %v2557_v53 = vld [vmem:[#allocation7 + $0x74] sm:$0xf] }
 0x26f   : > { %1340 = vmatpush.bf16.msra.mxu3 %v2342_v9  ;;  %v2596_v9 = vld [vmem:[#allocation4 + $0x28] sm:$0xf0]  ;;  %1357 = vmatpush.bf16.msrb.mxu0 %v2298_v10  ;;  %v1116_v35 = vpop.f32.mrf.mxu0  ;;  %v2158_v55 = vor.u32 %v2557_v53, %v2155_v54  ;;  %v3353_v10 = vld [vmem:[#allocation9 + $0x2] ss:$8 sm:$0x7] }
 0x270   : > { %v2302_v11 = vor.u32 %v2596_v9, %v2301_v8  ;;  %v2472_v8 = vor.u32 %v2638_v4, %v2471_v3  ;;  %v1333_v20 = vperm.slane %v3353_v10, 1  ;;  %v2625_v53 = vld [vmem:[#allocation4 + $0x110] sm:$0xf0]  ;;  %v2624_v54 = vld [vmem:[#allocation4 + $0x10c] sm:$0xf] }
 0x271   : > { %v2405_v3 = vld [vmem:[#allocation4 + $0xfc] sm:$0xf0]  ;;  %v2411_v4 = vld [vmem:[#allocation4 + $0xf8] sm:$0xf] }
 0x272   : > { %1367 = vmatpush.bf16.msrb.mxu1 %v2338_v56  ;;  %v2551_v56 = vld [vmem:[#allocation7 + $0x44] sm:$0xf] }
 0x273   : > { %1341 = vmatpush.bf16.msra.mxu3 %v2330_v23  ;;  %1358 = vmatpush.bf16.msrb.mxu0 %v2286_v21  ;;  %v3341_v23 = vpop.f32.mrf.mxu1  ;;  %v2134_v58 = vor.u32 %v2551_v56, %v2131_v57  ;;  %v2417_v57 = vld [vmem:[#allocation4 + $0x114] sm:$0xf0] }
 0x276   : > { %1100 = vmatmul.bf16.vlgmr.msrb.gmra.mxu3 %v3219_v18  ;;  %1368 = vmatpush.bf16.msrb.mxu1 %v2326_v59  ;;  %v2545_v59 = vld [vmem:[#allocation7 + $0x14] sm:$0xf] }
 0x277   : > { %1342 = vmatpush.bf16.msra.mxu3 %v2318_v33  ;;  %v2110_v61 = vor.u32 %v2545_v59, %v2107_v60  ;;  %1620 = vmatpush.bf16.msra.mxu0 %v2472_v8  ;;  %v2626_v59 = vld [vmem:[#allocation4 + $0x118] sm:$0xf0] }
 0x27a   : > { %1369 = vmatpush.bf16.msrb.mxu1 %v2314_v62  ;;  %v2463_v62 = vld [vmem:[#allocation4 + $0x168] sm:$0xf] }
 0x27b   : > { %1343 = vmatpush.bf16.msra.mxu3 %v2306_v44  ;;  %v1077_v31 = vpop.f32.mrf.mxu1  ;;  %v2227_v44 = vld [vmem:[#allocation7 + $0x118] sm:$0xf0]  ;;  %v2464_v1 = vor.u32 %v2637_v63, %v2463_v62 }
 0x27c   : > { %v2230_v45 = vor.u32 %v2575_v43, %v2227_v44  ;;  %v2447_v31 = vld [vmem:[#allocation4 + $0x140] sm:$0xf]  ;;  %v2428_v43 = vor.u32 %v2628_v41, %v2427_v40  ;;  %v2429_v44 = vld [vmem:[#allocation4 + $0x12c] sm:$0xf0]  ;;  %v2622_v63 = vld [vmem:[#allocation4 + $0xf8] sm:$0xf0] }
 0x27e   : > { %1370 = vmatpush.bf16.msrb.mxu1 %v2302_v11  ;;  %1133 = vmatpush.bf16.msra.mxu2 %v2230_v45  ;;  %v2451_v11 = vld [vmem:[#allocation4 + $0x150] sm:$0xf]  ;;  %v2435_v45 = vld [vmem:[#allocation4 + $0x128] sm:$0xf] }
 0x27f   : > { %1344 = vmatpush.bf16.msra.mxu3 %v2294_v5  ;;  %v3350_v5 = vld [vmem:[#allocation9 + $0x4] ss:$8 sm:$0x7]  ;;  %v2452_v14 = vor.u32 %v2634_v12, %v2451_v11  ;;  %v2436_v50 = vor.u32 %v2629_v46, %v2435_v45  ;;  %v2408_v12 = vor.u32 %v2621_v0, %v2405_v3 }
 0x280   : > { %v1148_v9 = vperm.slane %v3350_v5, 1 }
 0x281   : > { %v1088_v42 = vpop.f32.mrf.mxu2 }
 0x282   : > { %1371 = vmatpush.bf16.msrb.mxu1 %v2290_v22  ;;  %1134 = vmatpush.bf16.msra.mxu2 %v2206_v48  ;;  %v2460_v22 = vor.u32 %v2635_v17, %v2459_v16  ;;  %v2393_v16 = vld [vmem:[#allocation4 + $0xe4] sm:$0xf0]  ;;  %v2399_v17 = vld [vmem:[#allocation4 + $0xe0] sm:$0xf] }
 0x283   : > { %1345 = vmatpush.bf16.msra.mxu3 %v2282_v15  ;;  %v3348_v38 = vpop.f32.mrf.mxu1  ;;  %v2453_v15 = vld [vmem:[#allocation4 + $0x15c] sm:$0xf0] }
 0x284   : > { %v2456_v21 = vor.u32 %v2633_v13, %v2453_v15  ;;  %1621 = vmatpush.bf16.msra.mxu0 %v2460_v22  ;;  %v2618_v15 = vld [vmem:[#allocation4 + $0xdc] sm:$0xf] }
 0x286   : > { %1135 = vmatpush.bf16.msra.mxu2 %v2182_v52  ;;  %v2415_v52 = vld [vmem:[#allocation4 + $0x108] sm:$0xf] }
 0x287   : > { %1607 = vmatpush.bf16.msrb.mxu3 %v2468_v7  ;;  %v2416_v56 = vor.u32 %v2625_v53, %v2415_v52  ;;  %v2623_v7 = vld [vmem:[#allocation4 + $0x100] sm:$0xf0] }
 0x288   : > { %v2412_v13 = vor.u32 %v2623_v7, %v2411_v4 }
 0x289   : > { %v1090_v49 = vpop.f32.mrf.mxu2 }
 0x28a   : > { %1136 = vmatpush.bf16.msra.mxu2 %v2158_v55 }
 0x28b   : > { %1608 = vmatpush.bf16.msrb.mxu3 %v2456_v21 }
 0x28e   : > { %1137 = vmatpush.bf16.msra.mxu2 %v2134_v58  ;;  %v2423_v58 = vld [vmem:[#allocation4 + $0x110] sm:$0xf] }
 0x28f   : > { %v2424_v62 = vor.u32 %v2626_v59, %v2423_v58 }
 0x292   : > { %1138 = vmatpush.bf16.msra.mxu2 %v2110_v61  ;;  %v2420_v61 = vor.u32 %v2624_v54, %v2417_v57 }
 0x295   : > { %1139 = vmatmul.bf16.vlgmr.msra.gmra.mxu2 %v3219_v18 }
 0x296   : > { %1594 = vmatpush.bf16.msrb.mxu2 %v2464_v1 }
 0x29a   : > { %1595 = vmatpush.bf16.msrb.mxu2 %v2452_v14  ;;  %v2619_v14 = vld [vmem:[#allocation4 + $0xe0] sm:$0xf0] }
 0x2e9   : > { %v710_v24 = vpop.f32.mrf.mxu3 }
 0x2ea   : > { %v772_v26 = vadd.f32 %v3336_v6, %v710_v24  ;;  %v1129_v6 = vpop.f32.mrf.mxu1  ;;  %v1154_v24 = vadd.f32 %v1148_v9, %v1088_v42  ;;  %v2627_v42 = vld [vmem:[#allocation4 + $0x124] sm:$0xf]  ;;  %v2391_v9 = vld [vmem:[#allocation4 + $0xd8] sm:$0xf] }
 0x2eb   : > { %v1332_v6 = vperm.slane %v3353_v10, 0  ;;  %v2432_v49 = vor.u32 %v2627_v42, %v2429_v44 }
 0x2ec   : > { %v776_v30 = vadd.f32 %v775_v25, %v772_v26  ;;  %v2439_v25 = vld [vmem:[#allocation4 + $0x138] sm:$0xf]  ;;  %v2631_v26 = vld [vmem:[#allocation4 + $0x140] sm:$0xf0] }
 0x2ed   : > { %v2440_v29 = vor.u32 %v2631_v26, %v2439_v25  ;;  %v2392_v25 = vor.u32 %v2619_v14, %v2391_v9  ;;  %v2396_v26 = vor.u32 %v2618_v15, %v2393_v16  ;;  %v1157_v9 = vld [vmem:[#allocation9 + $0x5] ss:$8 sm:$0x7]  ;;  %v1458_v16 = vld [vmem:[#allocation9 + $0x3] ss:$8 sm:$0x7] }
 0x2ee   : > { %v777_v32 = vmax.f32 %v776_v30, 0.0  ;;  %v2441_v30 = vld [vmem:[#allocation4 + $0x144] sm:$0xf0] }
 0x2ef   : > { %v2444_v35 = vor.u32 %v2630_v27, %v2441_v30  ;;  %1596 = vmatpush.bf16.msrb.mxu2 %v2440_v29  ;;  %v2616_v29 = vld [vmem:[#allocation4 + $0xc8] sm:$0xf0]  ;;  %v2615_v30 = vld [vmem:[#allocation4 + $0xc4] sm:$0xf] }
 0x2f0   : > { %v1168_v33 = vpack.c.bf16 %v777_v32, %v777_v32  ;;  %v2632_v32 = vld [vmem:[#allocation4 + $0x148] sm:$0xf0] }
 0x2f1   : > { %v712_v34 = vpop.f32.mrf.mxu3  ;;  %1609 = vmatpush.bf16.msrb.mxu3 %v2444_v35  ;;  %v2644_v14 = vld [vmem:[%s3469_s2 + $0x128] sm:$0xff] }
 0x2f2   : > { %1346 = vmatmul.bf16.vlgmr.msra.gmra.mxu3 %v1168_v33  ;;  %1359 = vmatmul.bf16.vlgmr.msrb.gmra.mxu0 %v1168_v33 }
 0x2f3   : > { %1372 = vmatmul.bf16.vlgmr.msrb.gmra.mxu1 %v1168_v33  ;;  %v1147_v33 = vperm.slane %v3350_v5, 0  ;;  %1597 = vmatpush.bf16.msrb.mxu2 %v2428_v43 }
 0x2f5   : > { %v1153_v47 = vadd.f32 %v1147_v33, %v3341_v23  ;;  %1610 = vmatpush.bf16.msrb.mxu3 %v2432_v49  ;;  %v2403_v23 = vld [vmem:[#allocation4 + $0xf0] sm:$0xf]  ;;  %v2617_v33 = vld [vmem:[#allocation4 + $0xd0] sm:$0xf0] }
 0x2f6   : > { %v2404_v8 = vor.u32 %v2622_v63, %v2403_v23 }
 0x2f7   : > { %1598 = vmatpush.bf16.msrb.mxu2 %v2416_v56 }
 0x2f9   : > { %v3346_v36 = vpop.f32.mrf.mxu3  ;;  %1611 = vmatpush.bf16.msrb.mxu3 %v2420_v61 }
 0x2fb   : > { %1599 = vmatpush.bf16.msrb.mxu2 %v2404_v8  ;;  %v2646_v8 = vld [vmem:[%s3469_s2 + $0x138] sm:$0xff] }
 0x2fc   : > { %1760 = vmatpush.bf16.msra.mxu1 %v2646_v8 }
 0x2fd   : > { %1612 = vmatpush.bf16.msrb.mxu3 %v2408_v12  ;;  %v1159_v12 = vperm.slane %v1157_v9, 0 }
 0x2ff   : > { %1600 = vmatpush.bf16.msrb.mxu2 %v2392_v25 }
 0x301   : > { %v1103_v37 = vpop.f32.mrf.mxu3  ;;  %1613 = vmatpush.bf16.msrb.mxu3 %v2396_v26 }
 0x302   : > { %v2448_v37 = vor.u32 %v2632_v32, %v2447_v31  ;;  %v2381_v31 = vld [vmem:[#allocation4 + $0xcc] sm:$0xf0]  ;;  %v2387_v32 = vld [vmem:[#allocation4 + $0xc8] sm:$0xf] }
 0x304   : > { %1622 = vmatpush.bf16.msra.mxu0 %v2448_v37  ;;  %v2384_v37 = vor.u32 %v2615_v30, %v2381_v31 }
 0x306   : > { %1614 = vmatpush.bf16.msrb.mxu3 %v2384_v37 }
 0x308   : > { %1623 = vmatpush.bf16.msra.mxu0 %v2436_v50 }
 0x30c   : > { %1624 = vmatpush.bf16.msra.mxu0 %v2424_v62 }
 0x310   : > { %1625 = vmatpush.bf16.msra.mxu0 %v2412_v13  ;;  %v1160_v13 = vperm.slane %v1157_v9, 1 }
 0x318   : > { %v1140_v4 = vpop.f32.mrf.mxu2 }
 0x320   : > { %v1142_v7 = vpop.f32.mrf.mxu2 }
 0x36f   : > { %v1360_v19 = vpop.f32.mrf.mxu0 }
 0x370   : > { %v1361_v34 = vadd.f32 %v1360_v19, %v1333_v20  ;;  %v3358_v18 = vpop.f32.mrf.mxu1  ;;  %v2620_v20 = vld [vmem:[#allocation4 + $0xe8] sm:$0xf0]  ;;  %v2379_v19 = vld [vmem:[#allocation4 + $0xc0] sm:$0xf] }
 0x371   : > { %v2400_v27 = vor.u32 %v2620_v20, %v2399_v17  ;;  %v1165_v17 = vadd.f32 %v1159_v12, %v3344_v28  ;;  %v1166_v20 = vadd.f32 %v1160_v13, %v3348_v38 }
 0x372   : > { %v1397_v39 = vadd.f32 %v1361_v34, %v1154_v24  ;;  %v2380_v34 = vor.u32 %v2616_v29, %v2379_v19 }
 0x373   : > { %1626 = vmatpush.bf16.msra.mxu0 %v2400_v27  ;;  %v2642_v27 = vld [vmem:[%s3469_s2 + $0x118] sm:$0xff]  ;;  %v1634_v19 = vrot.slane %v1165_v17, 1  ;;  %v1657_v29 = vrot.slane %v1166_v20, 1 }
 0x374   : > { %v2376_v48 = vmul.f32 -1.442695, %v1397_v39  ;;  %1601 = vmatpush.bf16.msrb.mxu2 %v2380_v34 }
 0x375   : > { %v1347_v51 = vpop.f32.mrf.mxu3 }
 0x376   : > { %2738 = vpow2.f32 %v2376_v48  ;;  %v1348_v55 = vadd.f32 %v1347_v51, %v1332_v6  ;;  %v2388_v6 = vor.u32 %v2617_v33, %v2387_v32  ;;  %v1334_v51 = vperm.slane %v3353_v10, 2  ;;  %v2641_v33 = vld [vmem:[%s3469_s2 + $0x110] sm:$0xff] }
 0x377   : > { %v1362_v60 = vpop.f32.mrf.mxu0 }
 0x378   : > { %v1377_v1 = vadd.f32 %v1348_v55, %v1153_v47  ;;  %v1375_v2 = vpop.f32.mrf.mxu1  ;;  %1627 = vmatpush.bf16.msra.mxu0 %v2388_v6  ;;  %v1149_v47 = vperm.slane %v3350_v5, 2  ;;  %v1374_v58 = vadd.f32 %v3358_v18, %v1334_v51 }
 0x37a   : > { %v2375_v11 = vmul.f32 -1.442695, %v1377_v1  ;;  %v1155_v54 = vadd.f32 %v1149_v47, %v3346_v36  ;;  %v3366_v1 = vld [vmem:[#allocation11] sm:$0x3]  ;;  %v1161_v47 = vperm.slane %v1157_v9, 2 }
 0x37c   : > { %v2739_v21 = vpop.eup %2738  ;;  %2740 = vpow2.f32 %v2375_v11  ;;  %v2645_v11 = vld [vmem:[%s3469_s2 + $0x130] sm:$0xff] }
 0x37d   : > { %v1401_v22 = vadd.f32 1.0, %v2739_v21  ;;  %v1349_v24 = vpop.f32.mrf.mxu3  ;;  %1761 = vmatpush.bf16.msra.mxu1 %v2645_v11  ;;  %v1588_v21 = vperm.slane %v1458_v16, 0 }
 0x37e   : > { %v2643_v24 = vld [vmem:[%s3469_s2 + $0x120] sm:$0xff] }
 0x37f   : > { %2742 = vrcp.f32 %v1401_v22  ;;  %v1413_v5 = vand.u32 2147483648, %v1401_v22  ;;  %vm1407_vm10 = vweird.f32 %v1401_v22  ;;  %v1411_v60 = vand.u32 2147483647, %v1401_v22 }
 0x381   : > { %v1414_v62 = vor.u32 1.1754944e-38, %v1413_v5  ;;  %vm1412_vm12 = vcmp.eq.f32.partialorder %v1411_v60, 8.507059e+37  ;;  %1762 = vmatpush.bf16.msra.mxu1 %v2644_v14  ;;  %v1711_v14 = vld [vmem:[#allocation9 + $0x6] ss:$0 sm:$0xff] }
 0x382   : > { %v2741_v35 = vpop.eup %2740 }
 0x383   : > { %v1381_v39 = vadd.f32 1.0, %v2741_v35 }
 0x385   : > { %2744 = vrcp.f32 %v1381_v39  ;;  %v2743_v40 = vpop.eup %2742  ;;  %v1393_v46 = vand.u32 2147483648, %v1381_v39  ;;  %v1391_v49 = vand.u32 2147483647, %v1381_v39  ;;  %vm1387_vm6 = vweird.f32 %v1381_v39  ;;  %1763 = vmatpush.bf16.msra.mxu1 %v2643_v24 }
 0x386   : > { %v1403_v41 = vmul.f32 %v2743_v40, %v1401_v22  ;;  %vm1408_vm9 = vweird.f32 %v2743_v40  ;;  %v1589_v22 = vperm.slane %v1458_v16, 1 }
 0x387   : > { %v1394_v53 = vor.u32 1.1754944e-38, %v1393_v46  ;;  %vm1392_vm8 = vcmp.eq.f32.partialorder %v1391_v49, 8.507059e+37  ;;  %vm1409_vm11 = vmor %vm1407_vm10, %vm1408_vm9 }
 0x388   : > { %v1404_v44 = vsub.f32 1.0, %v1403_v41 }
 0x389   : > { %1764 = vmatpush.bf16.msra.mxu1 %v2642_v27 }
 0x38a   : > { %v1405_v50 = vmul.f32 %v2743_v40, %v1404_v44 }
 0x38b   : > { %v2745_v42 = vpop.eup %2744 }
 0x38c   : > { %v1383_v43 = vmul.f32 %v2745_v42, %v1381_v39  ;;  %vm1388_vm5 = vweird.f32 %v2745_v42  ;;  %v1406_v57 = vadd.f32 %v2743_v40, %v1405_v50  ;;  %v2640_v39 = vld [vmem:[%s3469_s2 + $0x108] sm:$0xff] }
 0x38d   : > { %vm1389_vm7 = vmor %vm1387_vm6, %vm1388_vm5  ;;  %1765 = vmatpush.bf16.msra.mxu1 %v2641_v33 }
 0x38e   : > { %v1384_v45 = vsub.f32 1.0, %v1383_v43  ;;  %v1410_v10 = vsel %vm1409_vm11, %v2743_v40, %v1406_v57  ;;  %v2639_v40 = vld [vmem:[%s3469_s2 + $0x100] sm:$0xff]  ;;  %v1590_v57 = vperm.slane %v1458_v16, 2 }
 0x38f   : > { %v1415_v23 = vsel %vm1412_vm12, %v1414_v62, %v1410_v10 }
 0x390   : > { %v1385_v48 = vmul.f32 %v2745_v42, %v1384_v45  ;;  %v1420_v63 = vsub.f32 1.0, %v1415_v23  ;;  %v1422_v2 = vmul.f32 %v3366_v1, %v1415_v23 }
 0x391   : > { %1766 = vmatpush.bf16.msra.mxu1 %v2640_v39 }
 0x392   : > { %v1386_v52 = vadd.f32 %v2745_v42, %v1385_v48 }
 0x394   : > { %v1390_v55 = vsel %vm1389_vm7, %v2745_v42, %v1386_v52 }
 0x395   : > { %v1395_v56 = vsel %vm1392_vm8, %v1394_v53, %v1390_v55  ;;  %1767 = vmatpush.bf16.msra.mxu1 %v2639_v40  ;;  %v1167_v53 = vadd.f32 %v1161_v47, %v1140_v4  ;;  %v1688_v4 = vrot.slane %v3366_v1, 1 }
 0x396   : > { %v1417_v59 = vmul.f32 %v1395_v56, %v1155_v54 }
 0x398   : > { %v1418_v61 = vadd.f32 %v1417_v59, %v1374_v58  ;;  %v1680_v59 = vrot.slane %v1167_v53, 1 }
 0x39a   : > { %2746 = vtanh.f32 %v1418_v61 }
 0x3a0   : > { %v2747_v36 = vpop.eup %2746 }
 0x3a1   : > { %v1421_v0 = vmul.f32 %v2747_v36, %v1420_v63 }
 0x3a3   : > { %v1423_v3 = vadd.f32 %v1422_v2, %v1421_v0 }
 0x3a5   : > { %v1424_v18 = vpack.c.bf16 %v1423_v3, %v1423_v3  ;;  %1692 = vst [vmem:[#allocation11] sm:$0x1] %v1423_v3 }
 0x3a7   : > { %1602 = vmatmul.bf16.vlgmr.msrb.gmra.mxu2 %v1424_v18  ;;  %1615 = vmatmul.bf16.vlgmr.msrb.gmra.mxu3 %v1424_v18 }
 0x3a8   : > { %1628 = vmatmul.bf16.vlgmr.msra.gmra.mxu0 %v1424_v18 }
 0x425   : > { %v1629_v15 = vpop.f32.mrf.mxu0 }
 0x426   : > { %v1630_v62 = vadd.f32 %v1629_v15, %v1590_v57 }
 0x42a   : > { %v1603_v25 = vpop.f32.mrf.mxu2  ;;  %v1616_v26 = vpop.f32.mrf.mxu3 }
 0x42b   : > { %v1604_v30 = vadd.f32 %v1603_v25, %v1588_v21  ;;  %v1617_v31 = vadd.f32 %v1616_v26, %v1589_v22 }
 0x42d   : > { %v1636_v28 = vadd.f32 %v1634_v19, %v1604_v30  ;;  %v1659_v32 = vadd.f32 %v1657_v29, %v1617_v31  ;;  %v1631_v38 = vpop.f32.mrf.mxu0 }
 0x42f   : > { %v2473_v34 = vmul.f32 -1.442695, %v1636_v28  ;;  %v2474_v35 = vmul.f32 -1.442695, %v1659_v32 }
 0x431   : > { %2748 = vpow2.f32 %v2473_v34 }
 0x432   : > { %2750 = vpow2.f32 %v2474_v35  ;;  %v1605_v37 = vpop.f32.mrf.mxu2  ;;  %v1618_v6 = vpop.f32.mrf.mxu3 }
 0x437   : > { %v2749_v41 = vpop.eup %2748 }
 0x438   : > { %v2751_v42 = vpop.eup %2750  ;;  %v1640_v43 = vadd.f32 1.0, %v2749_v41 }
 0x439   : > { %v1663_v44 = vadd.f32 1.0, %v2751_v42 }
 0x43a   : > { %2752 = vrcp.f32 %v1640_v43  ;;  %v1652_v51 = vand.u32 2147483648, %v1640_v43  ;;  %v1650_v55 = vand.u32 2147483647, %v1640_v43  ;;  %vm1646_vm14 = vweird.f32 %v1640_v43 }
 0x43b   : > { %2754 = vrcp.f32 %v1663_v44  ;;  %v1675_v23 = vand.u32 2147483648, %v1663_v44  ;;  %vm1669_vm3 = vweird.f32 %v1663_v44  ;;  %v1673_v36 = vand.u32 2147483647, %v1663_v44 }
 0x43c   : > { %v1653_v5 = vor.u32 1.1754944e-38, %v1652_v51  ;;  %vm1651_vm1 = vcmp.eq.f32.partialorder %v1650_v55, 8.507059e+37 }
 0x43d   : > { %v1676_v3 = vor.u32 1.1754944e-38, %v1675_v23  ;;  %vm1674_vm5 = vcmp.eq.f32.partialorder %v1673_v36, 8.507059e+37 }
 0x440   : > { %v2753_v45 = vpop.eup %2752 }
 0x441   : > { %v2755_v46 = vpop.eup %2754  ;;  %v1642_v48 = vmul.f32 %v2753_v45, %v1640_v43  ;;  %vm1647_vm13 = vweird.f32 %v2753_v45 }
 0x442   : > { %v1665_v49 = vmul.f32 %v2755_v46, %v1663_v44  ;;  %vm1648_vm15 = vmor %vm1646_vm14, %vm1647_vm13  ;;  %vm1670_vm2 = vweird.f32 %v2755_v46 }
 0x443   : > { %v1643_v50 = vsub.f32 1.0, %v1642_v48  ;;  %vm1671_vm4 = vmor %vm1669_vm3, %vm1670_vm2 }
 0x444   : > { %v1666_v52 = vsub.f32 1.0, %v1665_v49 }
 0x445   : > { %v1644_v54 = vmul.f32 %v2753_v45, %v1643_v50 }
 0x446   : > { %v1667_v56 = vmul.f32 %v2755_v46, %v1666_v52 }
 0x447   : > { %v1645_v58 = vadd.f32 %v2753_v45, %v1644_v54 }
 0x448   : > { %v1668_v10 = vadd.f32 %v2755_v46, %v1667_v56 }
 0x449   : > { %v1649_v60 = vsel %vm1648_vm15, %v2753_v45, %v1645_v58 }
 0x44a   : > { %v1654_v61 = vsel %vm1651_vm1, %v1653_v5, %v1649_v60  ;;  %v1672_v2 = vsel %vm1671_vm4, %v2755_v46, %v1668_v10 }
 0x44b   : > { %v1682_v63 = vmul.f32 %v1680_v59, %v1654_v61  ;;  %v1677_v18 = vsel %vm1674_vm5, %v1676_v3, %v1672_v2 }
 0x44c   : > { %v1685_v7 = vsub.f32 1.0, %v1677_v18  ;;  %v1690_v11 = vmul.f32 %v1688_v4, %v1677_v18 }
 0x44d   : > { %v1683_v0 = vadd.f32 %v1682_v63, %v1630_v62 }
 0x44f   : > { %2756 = vtanh.f32 %v1683_v0 }
 0x455   : > { %v2757_v8 = vpop.eup %2756 }
 0x456   : > { %v1686_v9 = vmul.f32 %v2757_v8, %v1685_v7 }
 0x458   : > { %v1691_v12 = vadd.f32 %v1690_v11, %v1686_v9 }
 0x45a   : > { %v1694_v13 = vpack.c.bf16 %v1691_v12, %v1691_v12  ;;  %1693 = vst [vmem:[#allocation11 + $0x1] sm:$0x1] %v1691_v12 }
 0x45b   : > { %2661 = dma.vmem_to_hbm [thread:$0]  (%p207_p2), %s1814_s4, 32, %s1816_s14, [#allocation12]  }
 0x45c   : > { %1768 = vmatmul.bf16.vlgmr.msra.gmra.mxu1 %v1694_v13  ;;  %s1787_s4 = scalar_lea.sflag [#allocation6], %s1786_s30  ;;  %s2909_s14 = scalar_lea.hbm %s2908_s25, 1 }
 0x45d   : > { %p2910_p1 = scmp.ne.s32.totalorder %s2908_s25, %s2909_s14  ;;  %p2915_p8 = scmp.lt.s32.totalorder %s2913_s21, %s2909_s14 }
 0x45f   : > { %p2911_p3 = pnand %p2910_p1, %p3105_p5  ;;  %p2916_p9 = por %p2915_p8, %p2914_p7 }
 0x461   : > { %p2912_p4 = pneg %p2911_p3 }
 0x463   : > { %p2917_p10 = pnand %p2916_p9, %p2912_p4 }
 0x4d9   : > { %v1769_v15 = vpop.f32.mrf.mxu1 }
 0x4da   : > { %v1770_v16 = vadd.f32 %v1769_v15, %v1711_v14 }
 0x4dc   : > { %v1773_v17 = vsel %vm558_vm0, %v1770_v16, -inf }
 0x4dd   : > { %1774 = vmax.xlane.f32.xlu1 %v1773_v17 }
 0x4e1   : > { %v1771_v20 = vpop.f32.mrf.mxu1 }
 0x550   : > { %v1775_v21 = vpop.xlane.xlu1 %1774 }
 0x551   : > { %v1776_v1 = vsub.f32 %v1770_v16, %v1775_v21 }
 0x553   : > { %v1777_v22 = vmul.f32 1.442695, %v1776_v1 }
 0x555   : > { %2758 = vpow2.f32 %v1777_v22 }
 0x55b   : > { %v2759_v24 = vpop.eup %2758 }
 0x55c   : > { %v1779_v25 = vsel %vm558_vm0, %v2759_v24, 0.0 }
 0x55d   : > { %1780 = vadd.xlane.f32.xlu1 %v1779_v25 }
 0x5d0   : > { %v1781_v26 = vpop.xlane.xlu1 %1780 }
 0x5d1   : > { %2760 = vlog2.f32 %v1781_v26 }
 0x5d7   : > { %v2761_v27 = vpop.eup %2760 }
 0x5d8   : > { %v1783_v19 = vmul.f32 0.6931472, %v2761_v27 }
 0x5da   : > { %v1784_v29 = vsub.f32 %v1776_v1, %v1783_v19 }
 0x5dc   : > { %1785 = vst [vmem:[%s3162_s11] sm:$0x1] %v1784_v29 }
 0x5dd   : > { %2920 = shalt.err (!%p2917_p10)
}
 0x5de   : > { %2659 = dma.vmem_to_hbm [thread:$0]  (%p3105_p5), %s1802_s12, 16, %s1804_s15, %s1787_s4  }
 0x5df   : > { %s2935_s11 = sshra.s32 %s1829_s3, 4  ;;  %s2941_s25 = scalar_lea.hbm %s3477_s10, 4  ;;  %s2936_s11 = int_to_ptr.hbm [resolvable:$true] %s2935_s11 }
 0x5e0   : > { %s2937_s24 = scalar_lea.hbm %s2936_s11, 1  ;;  %p2942_p0 = scmp.lt.s32.totalorder %s2936_s11, %s3477_s10 }
 0x5e1   : > { %p2938_p11 = scmp.ne.s32.totalorder %s2936_s11, %s2937_s24  ;;  %p2943_p1 = scmp.lt.s32.totalorder %s2941_s25, %s2937_s24 }
 0x5e3   : > { %p2939_p12 = pnand %p2938_p11, %p3105_p5  ;;  %p2944_p3 = por %p2943_p1, %p2942_p0 }
 0x5e5   : > { %p2940_p13 = pneg %p2939_p12 }
 0x5e7   : > { %p2945_p4 = pnand %p2944_p3, %p2940_p13 }
 0x5e9   : > { %2948 = shalt.err (!%p2945_p4)
}
 0x5ea   : > { %2662 = dma.vmem_to_hbm [thread:$0]  (%p3105_p5), %s3416_s16, 16, %s1829_s3, %s1787_s4  }
 0x5eb   : > { %2976 = dma.done.wait (%p207_p2), [#allocation12], 32  }
 0x5ec   : > { %2978 = vsyncadd (%p207_p2), [#allocation12], 4294967264 }
 0x5ed PF: > { %p2692_p7 = scmp.ge.s32.totalorder %s2997_s20, 2  ;;  %s3488_s12 = sadd.s32 4294967294, %s2997_s20  }
 0x5ee   : > { %s1845_s15 = sand.u32 1, %s3488_s12  }
 0x5ef   : > { %p2678_p8 = pnand %p2692_p7, %p3109_p6  ;;  %s1846_s26 = scalar_lea.sflag [#allocation6], %s1845_s15 }
 0x5f1   : > { %p2679_p9 = pneg %p2678_p8 }
 0x5f3   : > { %2980 = dma.done.wait (%p2679_p9), %s1846_s26, 32  }
 0x5f4   : > { %2982 = vsyncadd (%p2679_p9), %s1846_s26, 4294967264  ;;  %s3489_s16 = sld [smem:[#allocation19_spill]]  ;;  %p32_p5 = scmp.ge.s32.totalorder %s3089_s22, 6  }
 0x5f5   : > { %s3490_s17 = smov %s2989_s18  ;;  %s3491_s18 = smov %s2993_s19 }
 0x5f6   : > { %s3493_s20 = smov %s3089_s22  ;;  %34 = sbr.rel (!%p32_p5) target bundleno = 13 (0xd), region = 127 }
 0x5fa   : > { %s3492_s19 = smov %s3489_s16 }
 0x5fb   :  { %1860 = vsyncpa [#allocation5], 1 }
 0x5fc   :  { %1862 = vsyncpa [#allocation5 + $0x1], 1 }
 0x5fd   :  { %1863 = vsyncpa [#allocation8], 1 }
 0x5fe   :  { %1864 = vsyncpa [#allocation6], 1 }
 0x5ff   :  { %1866 = vsyncpa [#allocation6 + $0x1], 1 }
 0x600   :  { %1867 = vsyncpa [#allocation12], 1 }

</bundles_post_ra>
